<compile_context>
chip_gen: v5e
topology: v5e:2x2
jax: 0.10.0
libtpu: 0.0.40
codegen_flags: <defaults>
</compile_context>

<pallas_src>
import jax
import jax.numpy as jnp
from jax.experimental import pallas as pl
from jax.experimental.pallas import tpu as pltpu


def bilstm_decoder_kernel(
    seq_flat_ref,   # (S*B, E)  f32  raw token embeddings, time-major flattened
    class_emb_ref,  # (C, H)    f32  raw class embeddings
    Wxf_ref,        # (E, 8H)   f32  fwd input weights in interleaved gate cols
    Wxb_ref,        # (E, 8H)   f32  bwd input weights in interleaved gate cols
    Wh_ref,         # (2H, 8H)  bf16 block-structured recurrent weights
    b_ref,          # (1, 8H)   f32  interleaved merged biases (b_ih + b_hh)
    gWi_ref,        # (H, 3*H2) f32
    gWh_ref,        # (H2, 3*H2) bf16
    gbi_ref,        # (1, 3*H2) f32
    gbh_ref,        # (1, 3*H2) f32
    cW_ref,         # (H2, 2)   f32
    cb_ref,         # (1, 2)    f32
    out_ref,        # (C*B, 2)  f32  log-softmax outputs
    gxf_ref,        # VMEM scratch (S*B, 8H) f32
    gxb_ref,        # VMEM scratch (S*B, 8H) f32
):
    SB = seq_flat_ref.shape[0]
    H = Wh_ref.shape[0] // 2
    H2 = gWh_ref.shape[0]          # GRU hidden = 2H
    C = class_emb_ref.shape[0]
    B = out_ref.shape[0] // C
    S = SB // B

    # ---------------- hoisted input projections (one MXU call each) ---------
    X = jnp.tanh(seq_flat_ref[...])                         # (S*B, E), one EUP pass
    gxf_ref[...] = (jnp.dot(X, Wxf_ref[...],
                            preferred_element_type=jnp.float32) + b_ref[...])
    gxb_ref[...] = jnp.dot(X, Wxb_ref[...],
                           preferred_element_type=jnp.float32)

    Wh = Wh_ref[...]                                        # (2H, 8H) bf16

    def lstm_activations(gates):
        # gate column layout: [i(2H) | f(2H) | o(2H) | g(2H)], each [fwd|bwd]
        sig = jax.nn.sigmoid(gates[:, :6 * H])              # one EUP pass (i,f,o)
        g_g = jnp.tanh(gates[:, 6 * H:])                    # one EUP pass (g)
        return sig[:, 0:2 * H], sig[:, 2 * H:4 * H], sig[:, 4 * H:6 * H], g_g

    # --- step i == 0 (peeled): fwd and bwd both consume X[0]; h == c == 0 ---
    gates0 = gxf_ref[0:B, :] + gxb_ref[0:B, :]              # (B, 8H)
    i0, _f0, o0, g0 = lstm_activations(gates0)
    c_state = i0 * g0                                       # f*0 dropped
    h_state = o0 * jnp.tanh(c_state)                        # (B, 2H) = [fwd|bwd]
    bh0 = h_state[:, H:2 * H]                               # backward hidden @ step 0

    # --- steps 1 .. S-1 (fully unrolled; backward visits index S - i) -------
    for i in range(1, S):
        bidx = S - i
        gx = gxf_ref[i * B:(i + 1) * B, :] + gxb_ref[bidx * B:(bidx + 1) * B, :]
        g = jnp.dot(h_state.astype(jnp.bfloat16), Wh,
                    preferred_element_type=jnp.float32) + gx
        i_g, f_g, o_g, g_g = lstm_activations(g)
        c_state = f_g * c_state + i_g * g_g                 # contiguous (B, 2H)
        h_state = o_g * jnp.tanh(c_state)

    # seq_repr[-1] = concat(forward h @ last step, backward h @ step 0)
    h = jnp.concatenate([h_state[:, :H], bh0], axis=1)      # (B, 2H) — once

    # ---------------- decoder: GRUCell chain over classes -------------------
    gWh = gWh_ref[...]                                      # bf16
    gbh = gbh_ref[...]
    # class-embedding projection is state-independent -> hoisted out of loop
    GI = (jnp.dot(jnp.tanh(class_emb_ref[...]), gWi_ref[...],
                  preferred_element_type=jnp.float32) + gbi_ref[...])  # (C, 3H2)

    hs = []
    for j in range(C):
        gi = GI[j:j + 1]                                    # (1, 3*H2)
        gh = jnp.dot(h.astype(jnp.bfloat16), gWh,
                     preferred_element_type=jnp.float32) + gbh   # (B, 3*H2)
        # r and z fused: one sigmoid over the contiguous 2*H2 = 128-lane block
        rz = jax.nn.sigmoid(gi[:, :2 * H2] + gh[:, :2 * H2])
        r = rz[:, :H2]
        z = rz[:, H2:2 * H2]
        n = jnp.tanh(gi[:, 2 * H2:] + r * gh[:, 2 * H2:])
        h = jnp.tanh((1.0 - z) * n + z * h)                 # dropout == identity
        hs.append(h)

    # deferred classifier + log_softmax: one matmul, one pass, one store
    hcat = jnp.concatenate(hs, axis=0)                      # (C*B, H2)
    logits = (jnp.dot(hcat, cW_ref[...], preferred_element_type=jnp.float32)
              + cb_ref[...])                                # (C*B, 2)
    m = jnp.max(logits, axis=-1, keepdims=True)
    lse = m + jnp.log(jnp.sum(jnp.exp(logits - m), axis=-1, keepdims=True))
    out_ref[...] = logits - lse


def pallas_forward(seq_emb, class_emb, p):
    S, B, E = seq_emb.shape
    C, H = class_emb.shape

    # PyTorch LSTMCell column order is [i, f, g, o] (blocks of H);
    # reorder to (i, f, o, g) and interleave directions per gate block.
    def gate_cols(W):
        return W[:, 0:H], W[:, H:2 * H], W[:, 3 * H:4 * H], W[:, 2 * H:3 * H]

    fi, ff, fo, fg = gate_cols(p['fWi'])
    bi, bf, bo, bg = gate_cols(p['bWi'])
    ZE = jnp.zeros((E, H), jnp.float32)
    # column layout: [i_f, i_b | f_f, f_b | o_f, o_b | g_f, g_b]
    Wxf = jnp.concatenate([fi, ZE, ff, ZE, fo, ZE, fg, ZE], axis=1)   # (E, 8H)
    Wxb = jnp.concatenate([ZE, bi, ZE, bf, ZE, bo, ZE, bg], axis=1)   # (E, 8H)

    fhi, fhf, fho, fhg = gate_cols(p['fWh'])
    bhi, bhf, bho, bhg = gate_cols(p['bWh'])
    ZH = jnp.zeros((H, H), jnp.float32)
    Wh = jnp.concatenate([
        jnp.concatenate([fhi, ZH, fhf, ZH, fho, ZH, fhg, ZH], axis=1),  # fwd rows
        jnp.concatenate([ZH, bhi, ZH, bhf, ZH, bho, ZH, bhg], axis=1),  # bwd rows
    ], axis=0)                                                          # (2H, 8H)

    fbi, fbf, fbo, fbg = gate_cols(p['fb'])
    bbi, bbf, bbo, bbg = gate_cols(p['bb'])
    bias = jnp.concatenate([fbi, bbi, fbf, bbf, fbo, bbo, fbg, bbg], axis=1)

    # pre-flatten to (S*B, E) so the kernel needs no reshape copy
    seq_flat = seq_emb.reshape(S * B, E)

    vmem = pl.BlockSpec(memory_space=pltpu.MemorySpace.VMEM)
    inputs = [seq_flat, class_emb, Wxf, Wxb, Wh.astype(jnp.bfloat16), bias,
              p['gWi'], p['gWh'].astype(jnp.bfloat16), p['gbi'], p['gbh'],
              p['cW'], p['cb']]
    out = pl.pallas_call(
        bilstm_decoder_kernel,
        out_shape=jax.ShapeDtypeStruct((C * B, 2), jnp.float32),
        in_specs=[vmem] * len(inputs),
        out_specs=vmem,
        scratch_shapes=[pltpu.VMEM((S * B, 8 * H), jnp.float32),
                        pltpu.VMEM((S * B, 8 * H), jnp.float32)],
    )(*inputs)
    return out.reshape(C, B, 2)


def reference_forward(seq_emb, class_emb, p):
    """Pure-JAX reference mirroring the PyTorch forward (eval mode, f32)."""
    S, B, E = seq_emb.shape
    C, H = class_emb.shape
    H2 = 2 * H

    def lstm_cell(x, h, c, Wi, Wh, b):
        g = x @ Wi + h @ Wh + b
        i = jax.nn.sigmoid(g[:, :H])
        f = jax.nn.sigmoid(g[:, H:2 * H])
        gg = jnp.tanh(g[:, 2 * H:3 * H])
        o = jax.nn.sigmoid(g[:, 3 * H:])
        c2 = f * c + i * gg
        return o * jnp.tanh(c2), c2

    x = jnp.tanh(seq_emb)
    fh = jnp.zeros((B, H)); fc = jnp.zeros((B, H))
    bh = jnp.zeros((B, H)); bc = jnp.zeros((B, H))
    bh0 = None
    for i in range(S):
        fh, fc = lstm_cell(x[i], fh, fc, p['fWi'], p['fWh'], p['fb'])
        bidx = 0 if i == 0 else S - i
        bh, bc = lstm_cell(x[bidx], bh, bc, p['bWi'], p['bWh'], p['bb'])
        if i == 0:
            bh0 = bh
    state = jnp.concatenate([fh, bh0], axis=-1)
    ce_all = jnp.tanh(class_emb)
    outs = []
    for j in range(C):
        ce = ce_all[j:j + 1]
        gi = ce @ p['gWi'] + p['gbi']
        gh = state @ p['gWh'] + p['gbh']
        r = jax.nn.sigmoid(gi[:, :H2] + gh[:, :H2])
        z = jax.nn.sigmoid(gi[:, H2:2 * H2] + gh[:, H2:2 * H2])
        n = jnp.tanh(gi[:, 2 * H2:] + r * gh[:, 2 * H2:])
        state = jnp.tanh((1.0 - z) * n + z * state)
        logits = state @ p['cW'] + p['cb']
        outs.append(jax.nn.log_softmax(logits, axis=-1))
    return jnp.stack(outs)


def make_params(key, E, H, out_vocab, in_vocab):
    H2 = 2 * H
    ks = jax.random.split(key, 16)
    u = lambda k, shape, bnd: jax.random.uniform(k, shape, jnp.float32, -bnd, bnd)
    s_lstm = 1.0 / jnp.sqrt(H)
    s_gru = 1.0 / jnp.sqrt(H2)
    p = {
        # embedding tables
        'embed': jax.random.normal(ks[0], (in_vocab, E), jnp.float32),
        'embed_class': jax.random.normal(ks[1], (out_vocab, H), jnp.float32),
        # forward LSTMCell (pre-transposed; biases b_ih + b_hh merged)
        'fWi': u(ks[2], (E, 4 * H), s_lstm),
        'fWh': u(ks[3], (H, 4 * H), s_lstm),
        'fb':  u(ks[4], (1, 4 * H), s_lstm),
        # backward LSTMCell
        'bWi': u(ks[5], (E, 4 * H), s_lstm),
        'bWh': u(ks[6], (H, 4 * H), s_lstm),
        'bb':  u(ks[7], (1, 4 * H), s_lstm),
        # GRUCell (input H, hidden 2H); biases kept separate (reset-gate coupling)
        'gWi': u(ks[8], (H, 3 * H2), s_gru),
        'gWh': u(ks[9], (H2, 3 * H2), s_gru),
        'gbi': u(ks[10], (1, 3 * H2), s_gru),
        'gbh': u(ks[11], (1, 3 * H2), s_gru),
        # classifier Linear(2H -> 2)
        'cW':  u(ks[12], (H2, 2), s_gru),
        'cb':  u(ks[13], (1, 2), s_gru),
    }
    return p


if __name__ == "__main__":
    # Config-equivalent small sizes
    B, S = 8, 8           # batch, sequence length
    E, H = 32, 32         # embed_dim, hidden_dim  (4H = 128 -> one lane tile)
    IN_VOCAB = 100
    OUT_VOCAB = 6         # 6 toxic-comment labels
    OUTPUT_IDS = jnp.arange(OUT_VOCAB, dtype=jnp.int32)

    key = jax.random.PRNGKey(0)
    kp, kseq = jax.random.split(key)
    params = make_params(kp, E, H, OUT_VOCAB, IN_VOCAB)

    # Input token ids (batch, seq) -> embeddings, time-major (S, B, E)
    seq_ids = jax.random.randint(kseq, (B, S), 0, IN_VOCAB)
    seq_emb = jnp.transpose(params['embed'][seq_ids], (1, 0, 2)).astype(jnp.float32)
    class_emb = params['embed_class'][OUTPUT_IDS].astype(jnp.float32)

    out = pallas_forward(seq_emb, class_emb, params)
    out = jax.block_until_ready(out)

    ref = reference_forward(seq_emb, class_emb, params)
    assert out.shape == (OUT_VOCAB, B, 2)
    # tolerance loosened: recurrent matmul operands run in bf16 on the MXU
    assert jnp.allclose(out, ref, atol=3e-2, rtol=1e-2), "mismatch vs JAX reference"

    print("KERNEL_OK")
</pallas_src>

<mosaic_0001>
module attributes {stable_mosaic.version = 11 : i64} {
  func.func @bilstm_decoder_kernel(%arg0: memref<64x32xf32, #tpu.memory_space<vmem>>, %arg1: memref<6x32xf32, #tpu.memory_space<vmem>>, %arg2: memref<32x256xf32, #tpu.memory_space<vmem>>, %arg3: memref<32x256xf32, #tpu.memory_space<vmem>>, %arg4: memref<64x256xbf16, #tpu.memory_space<vmem>>, %arg5: memref<1x256xf32, #tpu.memory_space<vmem>>, %arg6: memref<32x192xf32, #tpu.memory_space<vmem>>, %arg7: memref<64x192xbf16, #tpu.memory_space<vmem>>, %arg8: memref<1x192xf32, #tpu.memory_space<vmem>>, %arg9: memref<1x192xf32, #tpu.memory_space<vmem>>, %arg10: memref<64x2xf32, #tpu.memory_space<vmem>>, %arg11: memref<1x2xf32, #tpu.memory_space<vmem>>, %arg12: memref<48x2xf32, #tpu.memory_space<vmem>>, %arg13: memref<64x256xf32, #tpu.memory_space<vmem>>, %arg14: memref<64x256xf32, #tpu.memory_space<vmem>>) attributes {dimension_semantics = [], scalar_prefetch = 0 : i64, scratch_operands = 2 : i64, tpu.core_type = #tpu.core_type<tc>} {
    %c0 = arith.constant 0 : index
    %c0_0 = arith.constant 0 : index
    %0 = vector.load %arg0[%c0, %c0_0] : memref<64x32xf32, #tpu.memory_space<vmem>>, vector<64x32xf32>
    %1 = math.tanh %0 : vector<64x32xf32>
    %c0_1 = arith.constant 0 : index
    %c0_2 = arith.constant 0 : index
    %2 = vector.load %arg2[%c0_1, %c0_2] : memref<32x256xf32, #tpu.memory_space<vmem>>, vector<32x256xf32>
    %cst = arith.constant dense<0.000000e+00> : vector<64x256xf32>
    %3 = tpu.matmul %1, %2, %cst {dimension_numbers = #tpu.dot_dimension_numbers<[1], [0], [0], [1], [0, 0, 1, 1], [], []>} : vector<64x32xf32>, vector<32x256xf32>, vector<64x256xf32> -> vector<64x256xf32>
    %c0_3 = arith.constant 0 : index
    %c0_4 = arith.constant 0 : index
    %4 = vector.load %arg5[%c0_3, %c0_4] : memref<1x256xf32, #tpu.memory_space<vmem>>, vector<1x256xf32>
    %5 = vector.broadcast %4 : vector<1x256xf32> to vector<64x256xf32>
    %6 = arith.addf %3, %5 : vector<64x256xf32>
    %c0_5 = arith.constant 0 : index
    %c0_6 = arith.constant 0 : index
    %7 = vector.load %arg13[%c0_5, %c0_6] : memref<64x256xf32, #tpu.memory_space<vmem>>, vector<64x256xf32>
    tpu.vector_store %arg13[%c0_5, %c0_6], %6 {strides = array<i32>} : memref<64x256xf32, #tpu.memory_space<vmem>>, vector<64x256xf32>,
    %c0_7 = arith.constant 0 : index
    %c0_8 = arith.constant 0 : index
    %8 = vector.load %arg3[%c0_7, %c0_8] : memref<32x256xf32, #tpu.memory_space<vmem>>, vector<32x256xf32>
    %cst_9 = arith.constant dense<0.000000e+00> : vector<64x256xf32>
    %9 = tpu.matmul %1, %8, %cst_9 {dimension_numbers = #tpu.dot_dimension_numbers<[1], [0], [0], [1], [0, 0, 1, 1], [], []>} : vector<64x32xf32>, vector<32x256xf32>, vector<64x256xf32> -> vector<64x256xf32>
    %c0_10 = arith.constant 0 : index
    %c0_11 = arith.constant 0 : index
    %10 = vector.load %arg14[%c0_10, %c0_11] : memref<64x256xf32, #tpu.memory_space<vmem>>, vector<64x256xf32>
    tpu.vector_store %arg14[%c0_10, %c0_11], %9 {strides = array<i32>} : memref<64x256xf32, #tpu.memory_space<vmem>>, vector<64x256xf32>,
    %c0_12 = arith.constant 0 : index
    %c0_13 = arith.constant 0 : index
    %11 = vector.load %arg4[%c0_12, %c0_13] : memref<64x256xbf16, #tpu.memory_space<vmem>>, vector<64x256xbf16>
    %c0_14 = arith.constant 0 : index
    %c0_15 = arith.constant 0 : index
    %12 = vector.load %arg13[%c0_14, %c0_15] : memref<64x256xf32, #tpu.memory_space<vmem>>, vector<8x256xf32>
    %c0_16 = arith.constant 0 : index
    %c0_17 = arith.constant 0 : index
    %13 = vector.load %arg14[%c0_16, %c0_17] : memref<64x256xf32, #tpu.memory_space<vmem>>, vector<8x256xf32>
    %14 = arith.addf %12, %13 : vector<8x256xf32>
    %15 = vector.extract_strided_slice %14 {offsets = [0, 0], sizes = [8, 192], strides = [1, 1]} : vector<8x256xf32> to vector<8x192xf32>
    %16 = arith.negf %15 : vector<8x192xf32>
    %17 = math.exp %16 : vector<8x192xf32>
    %cst_18 = arith.constant 1.000000e+00 : f32
    %18 = vector.broadcast %cst_18 : f32 to vector<8x192xf32>
    %19 = arith.addf %18, %17 : vector<8x192xf32>
    %20 = arith.divf %18, %19 : vector<8x192xf32>
    %21 = vector.extract_strided_slice %14 {offsets = [0, 192], sizes = [8, 64], strides = [1, 1]} : vector<8x256xf32> to vector<8x64xf32>
    %22 = math.tanh %21 : vector<8x64xf32>
    %23 = vector.extract_strided_slice %20 {offsets = [0, 0], sizes = [8, 64], strides = [1, 1]} : vector<8x192xf32> to vector<8x64xf32>
    %24 = vector.extract_strided_slice %20 {offsets = [0, 128], sizes = [8, 64], strides = [1, 1]} : vector<8x192xf32> to vector<8x64xf32>
    %25 = arith.mulf %23, %22 : vector<8x64xf32>
    %26 = math.tanh %25 : vector<8x64xf32>
    %27 = arith.mulf %24, %26 : vector<8x64xf32>
    %28 = vector.extract_strided_slice %27 {offsets = [0, 32], sizes = [8, 32], strides = [1, 1]} : vector<8x64xf32> to vector<8x32xf32>
    %c8 = arith.constant 8 : index
    %c0_19 = arith.constant 0 : index
    %29 = vector.load %arg13[%c8, %c0_19] : memref<64x256xf32, #tpu.memory_space<vmem>>, vector<8x256xf32>
    %c56 = arith.constant 56 : index
    %c0_20 = arith.constant 0 : index
    %30 = vector.load %arg14[%c56, %c0_20] : memref<64x256xf32, #tpu.memory_space<vmem>>, vector<8x256xf32>
    %31 = arith.addf %29, %30 : vector<8x256xf32>
    %32 = arith.truncf %27 : vector<8x64xf32> to vector<8x64xbf16>
    %cst_21 = arith.constant dense<0.000000e+00> : vector<8x256xf32>
    %33 = tpu.matmul %32, %11, %cst_21 {dimension_numbers = #tpu.dot_dimension_numbers<[1], [0], [0], [1], [0, 0, 1, 1], [], []>} : vector<8x64xbf16>, vector<64x256xbf16>, vector<8x256xf32> -> vector<8x256xf32>
    %34 = arith.addf %33, %31 : vector<8x256xf32>
    %35 = vector.extract_strided_slice %34 {offsets = [0, 0], sizes = [8, 192], strides = [1, 1]} : vector<8x256xf32> to vector<8x192xf32>
    %36 = arith.negf %35 : vector<8x192xf32>
    %37 = math.exp %36 : vector<8x192xf32>
    %cst_22 = arith.constant 1.000000e+00 : f32
    %38 = vector.broadcast %cst_22 : f32 to vector<8x192xf32>
    %39 = arith.addf %38, %37 : vector<8x192xf32>
    %40 = arith.divf %38, %39 : vector<8x192xf32>
    %41 = vector.extract_strided_slice %34 {offsets = [0, 192], sizes = [8, 64], strides = [1, 1]} : vector<8x256xf32> to vector<8x64xf32>
    %42 = math.tanh %41 : vector<8x64xf32>
    %43 = vector.extract_strided_slice %40 {offsets = [0, 0], sizes = [8, 64], strides = [1, 1]} : vector<8x192xf32> to vector<8x64xf32>
    %44 = vector.extract_strided_slice %40 {offsets = [0, 64], sizes = [8, 64], strides = [1, 1]} : vector<8x192xf32> to vector<8x64xf32>
    %45 = vector.extract_strided_slice %40 {offsets = [0, 128], sizes = [8, 64], strides = [1, 1]} : vector<8x192xf32> to vector<8x64xf32>
    %46 = arith.mulf %44, %25 : vector<8x64xf32>
    %47 = arith.mulf %43, %42 : vector<8x64xf32>
    %48 = arith.addf %46, %47 : vector<8x64xf32>
    %49 = math.tanh %48 : vector<8x64xf32>
    %50 = arith.mulf %45, %49 : vector<8x64xf32>
    %c16 = arith.constant 16 : index
    %c0_23 = arith.constant 0 : index
    %51 = vector.load %arg13[%c16, %c0_23] : memref<64x256xf32, #tpu.memory_space<vmem>>, vector<8x256xf32>
    %c48 = arith.constant 48 : index
    %c0_24 = arith.constant 0 : index
    %52 = vector.load %arg14[%c48, %c0_24] : memref<64x256xf32, #tpu.memory_space<vmem>>, vector<8x256xf32>
    %53 = arith.addf %51, %52 : vector<8x256xf32>
    %54 = arith.truncf %50 : vector<8x64xf32> to vector<8x64xbf16>
    %cst_25 = arith.constant dense<0.000000e+00> : vector<8x256xf32>
    %55 = tpu.matmul %54, %11, %cst_25 {dimension_numbers = #tpu.dot_dimension_numbers<[1], [0], [0], [1], [0, 0, 1, 1], [], []>} : vector<8x64xbf16>, vector<64x256xbf16>, vector<8x256xf32> -> vector<8x256xf32>
    %56 = arith.addf %55, %53 : vector<8x256xf32>
    %57 = vector.extract_strided_slice %56 {offsets = [0, 0], sizes = [8, 192], strides = [1, 1]} : vector<8x256xf32> to vector<8x192xf32>
    %58 = arith.negf %57 : vector<8x192xf32>
    %59 = math.exp %58 : vector<8x192xf32>
    %cst_26 = arith.constant 1.000000e+00 : f32
    %60 = vector.broadcast %cst_26 : f32 to vector<8x192xf32>
    %61 = arith.addf %60, %59 : vector<8x192xf32>
    %62 = arith.divf %60, %61 : vector<8x192xf32>
    %63 = vector.extract_strided_slice %56 {offsets = [0, 192], sizes = [8, 64], strides = [1, 1]} : vector<8x256xf32> to vector<8x64xf32>
    %64 = math.tanh %63 : vector<8x64xf32>
    %65 = vector.extract_strided_slice %62 {offsets = [0, 0], sizes = [8, 64], strides = [1, 1]} : vector<8x192xf32> to vector<8x64xf32>
    %66 = vector.extract_strided_slice %62 {offsets = [0, 64], sizes = [8, 64], strides = [1, 1]} : vector<8x192xf32> to vector<8x64xf32>
    %67 = vector.extract_strided_slice %62 {offsets = [0, 128], sizes = [8, 64], strides = [1, 1]} : vector<8x192xf32> to vector<8x64xf32>
    %68 = arith.mulf %66, %48 : vector<8x64xf32>
    %69 = arith.mulf %65, %64 : vector<8x64xf32>
    %70 = arith.addf %68, %69 : vector<8x64xf32>
    %71 = math.tanh %70 : vector<8x64xf32>
    %72 = arith.mulf %67, %71 : vector<8x64xf32>
    %c24 = arith.constant 24 : index
    %c0_27 = arith.constant 0 : index
    %73 = vector.load %arg13[%c24, %c0_27] : memref<64x256xf32, #tpu.memory_space<vmem>>, vector<8x256xf32>
    %c40 = arith.constant 40 : index
    %c0_28 = arith.constant 0 : index
    %74 = vector.load %arg14[%c40, %c0_28] : memref<64x256xf32, #tpu.memory_space<vmem>>, vector<8x256xf32>
    %75 = arith.addf %73, %74 : vector<8x256xf32>
    %76 = arith.truncf %72 : vector<8x64xf32> to vector<8x64xbf16>
    %cst_29 = arith.constant dense<0.000000e+00> : vector<8x256xf32>
    %77 = tpu.matmul %76, %11, %cst_29 {dimension_numbers = #tpu.dot_dimension_numbers<[1], [0], [0], [1], [0, 0, 1, 1], [], []>} : vector<8x64xbf16>, vector<64x256xbf16>, vector<8x256xf32> -> vector<8x256xf32>
    %78 = arith.addf %77, %75 : vector<8x256xf32>
    %79 = vector.extract_strided_slice %78 {offsets = [0, 0], sizes = [8, 192], strides = [1, 1]} : vector<8x256xf32> to vector<8x192xf32>
    %80 = arith.negf %79 : vector<8x192xf32>
    %81 = math.exp %80 : vector<8x192xf32>
    %cst_30 = arith.constant 1.000000e+00 : f32
    %82 = vector.broadcast %cst_30 : f32 to vector<8x192xf32>
    %83 = arith.addf %82, %81 : vector<8x192xf32>
    %84 = arith.divf %82, %83 : vector<8x192xf32>
    %85 = vector.extract_strided_slice %78 {offsets = [0, 192], sizes = [8, 64], strides = [1, 1]} : vector<8x256xf32> to vector<8x64xf32>
    %86 = math.tanh %85 : vector<8x64xf32>
    %87 = vector.extract_strided_slice %84 {offsets = [0, 0], sizes = [8, 64], strides = [1, 1]} : vector<8x192xf32> to vector<8x64xf32>
    %88 = vector.extract_strided_slice %84 {offsets = [0, 64], sizes = [8, 64], strides = [1, 1]} : vector<8x192xf32> to vector<8x64xf32>
    %89 = vector.extract_strided_slice %84 {offsets = [0, 128], sizes = [8, 64], strides = [1, 1]} : vector<8x192xf32> to vector<8x64xf32>
    %90 = arith.mulf %88, %70 : vector<8x64xf32>
    %91 = arith.mulf %87, %86 : vector<8x64xf32>
    %92 = arith.addf %90, %91 : vector<8x64xf32>
    %93 = math.tanh %92 : vector<8x64xf32>
    %94 = arith.mulf %89, %93 : vector<8x64xf32>
    %c32 = arith.constant 32 : index
    %c0_31 = arith.constant 0 : index
    %95 = vector.load %arg13[%c32, %c0_31] : memref<64x256xf32, #tpu.memory_space<vmem>>, vector<8x256xf32>
    %c32_32 = arith.constant 32 : index
    %c0_33 = arith.constant 0 : index
    %96 = vector.load %arg14[%c32_32, %c0_33] : memref<64x256xf32, #tpu.memory_space<vmem>>, vector<8x256xf32>
    %97 = arith.addf %95, %96 : vector<8x256xf32>
    %98 = arith.truncf %94 : vector<8x64xf32> to vector<8x64xbf16>
    %cst_34 = arith.constant dense<0.000000e+00> : vector<8x256xf32>
    %99 = tpu.matmul %98, %11, %cst_34 {dimension_numbers = #tpu.dot_dimension_numbers<[1], [0], [0], [1], [0, 0, 1, 1], [], []>} : vector<8x64xbf16>, vector<64x256xbf16>, vector<8x256xf32> -> vector<8x256xf32>
    %100 = arith.addf %99, %97 : vector<8x256xf32>
    %101 = vector.extract_strided_slice %100 {offsets = [0, 0], sizes = [8, 192], strides = [1, 1]} : vector<8x256xf32> to vector<8x192xf32>
    %102 = arith.negf %101 : vector<8x192xf32>
    %103 = math.exp %102 : vector<8x192xf32>
    %cst_35 = arith.constant 1.000000e+00 : f32
    %104 = vector.broadcast %cst_35 : f32 to vector<8x192xf32>
    %105 = arith.addf %104, %103 : vector<8x192xf32>
    %106 = arith.divf %104, %105 : vector<8x192xf32>
    %107 = vector.extract_strided_slice %100 {offsets = [0, 192], sizes = [8, 64], strides = [1, 1]} : vector<8x256xf32> to vector<8x64xf32>
    %108 = math.tanh %107 : vector<8x64xf32>
    %109 = vector.extract_strided_slice %106 {offsets = [0, 0], sizes = [8, 64], strides = [1, 1]} : vector<8x192xf32> to vector<8x64xf32>
    %110 = vector.extract_strided_slice %106 {offsets = [0, 64], sizes = [8, 64], strides = [1, 1]} : vector<8x192xf32> to vector<8x64xf32>
    %111 = vector.extract_strided_slice %106 {offsets = [0, 128], sizes = [8, 64], strides = [1, 1]} : vector<8x192xf32> to vector<8x64xf32>
    %112 = arith.mulf %110, %92 : vector<8x64xf32>
    %113 = arith.mulf %109, %108 : vector<8x64xf32>
    %114 = arith.addf %112, %113 : vector<8x64xf32>
    %115 = math.tanh %114 : vector<8x64xf32>
    %116 = arith.mulf %111, %115 : vector<8x64xf32>
    %c40_36 = arith.constant 40 : index
    %c0_37 = arith.constant 0 : index
    %117 = vector.load %arg13[%c40_36, %c0_37] : memref<64x256xf32, #tpu.memory_space<vmem>>, vector<8x256xf32>
    %c24_38 = arith.constant 24 : index
    %c0_39 = arith.constant 0 : index
    %118 = vector.load %arg14[%c24_38, %c0_39] : memref<64x256xf32, #tpu.memory_space<vmem>>, vector<8x256xf32>
    %119 = arith.addf %117, %118 : vector<8x256xf32>
    %120 = arith.truncf %116 : vector<8x64xf32> to vector<8x64xbf16>
    %cst_40 = arith.constant dense<0.000000e+00> : vector<8x256xf32>
    %121 = tpu.matmul %120, %11, %cst_40 {dimension_numbers = #tpu.dot_dimension_numbers<[1], [0], [0], [1], [0, 0, 1, 1], [], []>} : vector<8x64xbf16>, vector<64x256xbf16>, vector<8x256xf32> -> vector<8x256xf32>
    %122 = arith.addf %121, %119 : vector<8x256xf32>
    %123 = vector.extract_strided_slice %122 {offsets = [0, 0], sizes = [8, 192], strides = [1, 1]} : vector<8x256xf32> to vector<8x192xf32>
    %124 = arith.negf %123 : vector<8x192xf32>
    %125 = math.exp %124 : vector<8x192xf32>
    %cst_41 = arith.constant 1.000000e+00 : f32
    %126 = vector.broadcast %cst_41 : f32 to vector<8x192xf32>
    %127 = arith.addf %126, %125 : vector<8x192xf32>
    %128 = arith.divf %126, %127 : vector<8x192xf32>
    %129 = vector.extract_strided_slice %122 {offsets = [0, 192], sizes = [8, 64], strides = [1, 1]} : vector<8x256xf32> to vector<8x64xf32>
    %130 = math.tanh %129 : vector<8x64xf32>
    %131 = vector.extract_strided_slice %128 {offsets = [0, 0], sizes = [8, 64], strides = [1, 1]} : vector<8x192xf32> to vector<8x64xf32>
    %132 = vector.extract_strided_slice %128 {offsets = [0, 64], sizes = [8, 64], strides = [1, 1]} : vector<8x192xf32> to vector<8x64xf32>
    %133 = vector.extract_strided_slice %128 {offsets = [0, 128], sizes = [8, 64], strides = [1, 1]} : vector<8x192xf32> to vector<8x64xf32>
    %134 = arith.mulf %132, %114 : vector<8x64xf32>
    %135 = arith.mulf %131, %130 : vector<8x64xf32>
    %136 = arith.addf %134, %135 : vector<8x64xf32>
    %137 = math.tanh %136 : vector<8x64xf32>
    %138 = arith.mulf %133, %137 : vector<8x64xf32>
    %c48_42 = arith.constant 48 : index
    %c0_43 = arith.constant 0 : index
    %139 = vector.load %arg13[%c48_42, %c0_43] : memref<64x256xf32, #tpu.memory_space<vmem>>, vector<8x256xf32>
    %c16_44 = arith.constant 16 : index
    %c0_45 = arith.constant 0 : index
    %140 = vector.load %arg14[%c16_44, %c0_45] : memref<64x256xf32, #tpu.memory_space<vmem>>, vector<8x256xf32>
    %141 = arith.addf %139, %140 : vector<8x256xf32>
    %142 = arith.truncf %138 : vector<8x64xf32> to vector<8x64xbf16>
    %cst_46 = arith.constant dense<0.000000e+00> : vector<8x256xf32>
    %143 = tpu.matmul %142, %11, %cst_46 {dimension_numbers = #tpu.dot_dimension_numbers<[1], [0], [0], [1], [0, 0, 1, 1], [], []>} : vector<8x64xbf16>, vector<64x256xbf16>, vector<8x256xf32> -> vector<8x256xf32>
    %144 = arith.addf %143, %141 : vector<8x256xf32>
    %145 = vector.extract_strided_slice %144 {offsets = [0, 0], sizes = [8, 192], strides = [1, 1]} : vector<8x256xf32> to vector<8x192xf32>
    %146 = arith.negf %145 : vector<8x192xf32>
    %147 = math.exp %146 : vector<8x192xf32>
    %cst_47 = arith.constant 1.000000e+00 : f32
    %148 = vector.broadcast %cst_47 : f32 to vector<8x192xf32>
    %149 = arith.addf %148, %147 : vector<8x192xf32>
    %150 = arith.divf %148, %149 : vector<8x192xf32>
    %151 = vector.extract_strided_slice %144 {offsets = [0, 192], sizes = [8, 64], strides = [1, 1]} : vector<8x256xf32> to vector<8x64xf32>
    %152 = math.tanh %151 : vector<8x64xf32>
    %153 = vector.extract_strided_slice %150 {offsets = [0, 0], sizes = [8, 64], strides = [1, 1]} : vector<8x192xf32> to vector<8x64xf32>
    %154 = vector.extract_strided_slice %150 {offsets = [0, 64], sizes = [8, 64], strides = [1, 1]} : vector<8x192xf32> to vector<8x64xf32>
    %155 = vector.extract_strided_slice %150 {offsets = [0, 128], sizes = [8, 64], strides = [1, 1]} : vector<8x192xf32> to vector<8x64xf32>
    %156 = arith.mulf %154, %136 : vector<8x64xf32>
    %157 = arith.mulf %153, %152 : vector<8x64xf32>
    %158 = arith.addf %156, %157 : vector<8x64xf32>
    %159 = math.tanh %158 : vector<8x64xf32>
    %160 = arith.mulf %155, %159 : vector<8x64xf32>
    %c56_48 = arith.constant 56 : index
    %c0_49 = arith.constant 0 : index
    %161 = vector.load %arg13[%c56_48, %c0_49] : memref<64x256xf32, #tpu.memory_space<vmem>>, vector<8x256xf32>
    %c8_50 = arith.constant 8 : index
    %c0_51 = arith.constant 0 : index
    %162 = vector.load %arg14[%c8_50, %c0_51] : memref<64x256xf32, #tpu.memory_space<vmem>>, vector<8x256xf32>
    %163 = arith.addf %161, %162 : vector<8x256xf32>
    %164 = arith.truncf %160 : vector<8x64xf32> to vector<8x64xbf16>
    %cst_52 = arith.constant dense<0.000000e+00> : vector<8x256xf32>
    %165 = tpu.matmul %164, %11, %cst_52 {dimension_numbers = #tpu.dot_dimension_numbers<[1], [0], [0], [1], [0, 0, 1, 1], [], []>} : vector<8x64xbf16>, vector<64x256xbf16>, vector<8x256xf32> -> vector<8x256xf32>
    %166 = arith.addf %165, %163 : vector<8x256xf32>
    %167 = vector.extract_strided_slice %166 {offsets = [0, 0], sizes = [8, 192], strides = [1, 1]} : vector<8x256xf32> to vector<8x192xf32>
    %168 = arith.negf %167 : vector<8x192xf32>
    %169 = math.exp %168 : vector<8x192xf32>
    %cst_53 = arith.constant 1.000000e+00 : f32
    %170 = vector.broadcast %cst_53 : f32 to vector<8x192xf32>
    %171 = arith.addf %170, %169 : vector<8x192xf32>
    %172 = arith.divf %170, %171 : vector<8x192xf32>
    %173 = vector.extract_strided_slice %166 {offsets = [0, 192], sizes = [8, 64], strides = [1, 1]} : vector<8x256xf32> to vector<8x64xf32>
    %174 = math.tanh %173 : vector<8x64xf32>
    %175 = vector.extract_strided_slice %172 {offsets = [0, 0], sizes = [8, 64], strides = [1, 1]} : vector<8x192xf32> to vector<8x64xf32>
    %176 = vector.extract_strided_slice %172 {offsets = [0, 64], sizes = [8, 64], strides = [1, 1]} : vector<8x192xf32> to vector<8x64xf32>
    %177 = vector.extract_strided_slice %172 {offsets = [0, 128], sizes = [8, 64], strides = [1, 1]} : vector<8x192xf32> to vector<8x64xf32>
    %178 = arith.mulf %176, %158 : vector<8x64xf32>
    %179 = arith.mulf %175, %174 : vector<8x64xf32>
    %180 = arith.addf %178, %179 : vector<8x64xf32>
    %181 = math.tanh %180 : vector<8x64xf32>
    %182 = arith.mulf %177, %181 : vector<8x64xf32>
    %183 = vector.extract_strided_slice %182 {offsets = [0, 0], sizes = [8, 32], strides = [1, 1]} : vector<8x64xf32> to vector<8x32xf32>
    %184 = tpu.concatenate %183, %28 in 1 : vector<8x32xf32>, vector<8x32xf32> -> vector<8x64xf32>
    %c0_54 = arith.constant 0 : index
    %c0_55 = arith.constant 0 : index
    %185 = vector.load %arg7[%c0_54, %c0_55] : memref<64x192xbf16, #tpu.memory_space<vmem>>, vector<64x192xbf16>
    %c0_56 = arith.constant 0 : index
    %c0_57 = arith.constant 0 : index
    %186 = vector.load %arg9[%c0_56, %c0_57] : memref<1x192xf32, #tpu.memory_space<vmem>>, vector<1x192xf32>
    %c0_58 = arith.constant 0 : index
    %c0_59 = arith.constant 0 : index
    %187 = vector.load %arg1[%c0_58, %c0_59] : memref<6x32xf32, #tpu.memory_space<vmem>>, vector<6x32xf32>
    %188 = math.tanh %187 : vector<6x32xf32>
    %c0_60 = arith.constant 0 : index
    %c0_61 = arith.constant 0 : index
    %189 = vector.load %arg6[%c0_60, %c0_61] : memref<32x192xf32, #tpu.memory_space<vmem>>, vector<32x192xf32>
    %cst_62 = arith.constant dense<0.000000e+00> : vector<6x192xf32>
    %190 = tpu.matmul %188, %189, %cst_62 {dimension_numbers = #tpu.dot_dimension_numbers<[1], [0], [0], [1], [0, 0, 1, 1], [], []>} : vector<6x32xf32>, vector<32x192xf32>, vector<6x192xf32> -> vector<6x192xf32>
    %c0_63 = arith.constant 0 : index
    %c0_64 = arith.constant 0 : index
    %191 = vector.load %arg8[%c0_63, %c0_64] : memref<1x192xf32, #tpu.memory_space<vmem>>, vector<1x192xf32>
    %192 = vector.broadcast %191 : vector<1x192xf32> to vector<6x192xf32>
    %193 = arith.addf %190, %192 : vector<6x192xf32>
    %194 = vector.extract_strided_slice %193 {offsets = [0, 0], sizes = [1, 192], strides = [1, 1]} : vector<6x192xf32> to vector<1x192xf32>
    %195 = arith.truncf %184 : vector<8x64xf32> to vector<8x64xbf16>
    %cst_65 = arith.constant dense<0.000000e+00> : vector<8x192xf32>
    %196 = tpu.matmul %195, %185, %cst_65 {dimension_numbers = #tpu.dot_dimension_numbers<[1], [0], [0], [1], [0, 0, 1, 1], [], []>} : vector<8x64xbf16>, vector<64x192xbf16>, vector<8x192xf32> -> vector<8x192xf32>
    %197 = vector.broadcast %186 : vector<1x192xf32> to vector<8x192xf32>
    %198 = arith.addf %196, %197 : vector<8x192xf32>
    %199 = vector.extract_strided_slice %194 {offsets = [0, 0], sizes = [1, 128], strides = [1, 1]} : vector<1x192xf32> to vector<1x128xf32>
    %200 = vector.extract_strided_slice %198 {offsets = [0, 0], sizes = [8, 128], strides = [1, 1]} : vector<8x192xf32> to vector<8x128xf32>
    %201 = vector.broadcast %199 : vector<1x128xf32> to vector<8x128xf32>
    %202 = arith.addf %201, %200 : vector<8x128xf32>
    %203 = arith.negf %202 : vector<8x128xf32>
    %204 = math.exp %203 : vector<8x128xf32>
    %cst_66 = arith.constant 1.000000e+00 : f32
    %205 = vector.broadcast %cst_66 : f32 to vector<8x128xf32>
    %206 = arith.addf %205, %204 : vector<8x128xf32>
    %207 = arith.divf %205, %206 : vector<8x128xf32>
    %208 = vector.extract_strided_slice %207 {offsets = [0, 0], sizes = [8, 64], strides = [1, 1]} : vector<8x128xf32> to vector<8x64xf32>
    %209 = vector.extract_strided_slice %207 {offsets = [0, 64], sizes = [8, 64], strides = [1, 1]} : vector<8x128xf32> to vector<8x64xf32>
    %210 = vector.extract_strided_slice %194 {offsets = [0, 128], sizes = [1, 64], strides = [1, 1]} : vector<1x192xf32> to vector<1x64xf32>
    %211 = vector.extract_strided_slice %198 {offsets = [0, 128], sizes = [8, 64], strides = [1, 1]} : vector<8x192xf32> to vector<8x64xf32>
    %212 = arith.mulf %208, %211 : vector<8x64xf32>
    %213 = vector.broadcast %210 : vector<1x64xf32> to vector<8x64xf32>
    %214 = arith.addf %213, %212 : vector<8x64xf32>
    %215 = math.tanh %214 : vector<8x64xf32>
    %cst_67 = arith.constant 1.000000e+00 : f32
    %216 = vector.broadcast %cst_67 : f32 to vector<8x64xf32>
    %217 = arith.subf %216, %209 : vector<8x64xf32>
    %218 = arith.mulf %217, %215 : vector<8x64xf32>
    %219 = arith.mulf %209, %184 : vector<8x64xf32>
    %220 = arith.addf %218, %219 : vector<8x64xf32>
    %221 = math.tanh %220 : vector<8x64xf32>
    %222 = vector.extract_strided_slice %193 {offsets = [1, 0], sizes = [1, 192], strides = [1, 1]} : vector<6x192xf32> to vector<1x192xf32>
    %223 = arith.truncf %221 : vector<8x64xf32> to vector<8x64xbf16>
    %cst_68 = arith.constant dense<0.000000e+00> : vector<8x192xf32>
    %224 = tpu.matmul %223, %185, %cst_68 {dimension_numbers = #tpu.dot_dimension_numbers<[1], [0], [0], [1], [0, 0, 1, 1], [], []>} : vector<8x64xbf16>, vector<64x192xbf16>, vector<8x192xf32> -> vector<8x192xf32>
    %225 = vector.broadcast %186 : vector<1x192xf32> to vector<8x192xf32>
    %226 = arith.addf %224, %225 : vector<8x192xf32>
    %227 = vector.extract_strided_slice %222 {offsets = [0, 0], sizes = [1, 128], strides = [1, 1]} : vector<1x192xf32> to vector<1x128xf32>
    %228 = vector.extract_strided_slice %226 {offsets = [0, 0], sizes = [8, 128], strides = [1, 1]} : vector<8x192xf32> to vector<8x128xf32>
    %229 = vector.broadcast %227 : vector<1x128xf32> to vector<8x128xf32>
    %230 = arith.addf %229, %228 : vector<8x128xf32>
    %231 = arith.negf %230 : vector<8x128xf32>
    %232 = math.exp %231 : vector<8x128xf32>
    %cst_69 = arith.constant 1.000000e+00 : f32
    %233 = vector.broadcast %cst_69 : f32 to vector<8x128xf32>
    %234 = arith.addf %233, %232 : vector<8x128xf32>
    %235 = arith.divf %233, %234 : vector<8x128xf32>
    %236 = vector.extract_strided_slice %235 {offsets = [0, 0], sizes = [8, 64], strides = [1, 1]} : vector<8x128xf32> to vector<8x64xf32>
    %237 = vector.extract_strided_slice %235 {offsets = [0, 64], sizes = [8, 64], strides = [1, 1]} : vector<8x128xf32> to vector<8x64xf32>
    %238 = vector.extract_strided_slice %222 {offsets = [0, 128], sizes = [1, 64], strides = [1, 1]} : vector<1x192xf32> to vector<1x64xf32>
    %239 = vector.extract_strided_slice %226 {offsets = [0, 128], sizes = [8, 64], strides = [1, 1]} : vector<8x192xf32> to vector<8x64xf32>
    %240 = arith.mulf %236, %239 : vector<8x64xf32>
    %241 = vector.broadcast %238 : vector<1x64xf32> to vector<8x64xf32>
    %242 = arith.addf %241, %240 : vector<8x64xf32>
    %243 = math.tanh %242 : vector<8x64xf32>
    %cst_70 = arith.constant 1.000000e+00 : f32
    %244 = vector.broadcast %cst_70 : f32 to vector<8x64xf32>
    %245 = arith.subf %244, %237 : vector<8x64xf32>
    %246 = arith.mulf %245, %243 : vector<8x64xf32>
    %247 = arith.mulf %237, %221 : vector<8x64xf32>
    %248 = arith.addf %246, %247 : vector<8x64xf32>
    %249 = math.tanh %248 : vector<8x64xf32>
    %250 = vector.extract_strided_slice %193 {offsets = [2, 0], sizes = [1, 192], strides = [1, 1]} : vector<6x192xf32> to vector<1x192xf32>
    %251 = arith.truncf %249 : vector<8x64xf32> to vector<8x64xbf16>
    %cst_71 = arith.constant dense<0.000000e+00> : vector<8x192xf32>
    %252 = tpu.matmul %251, %185, %cst_71 {dimension_numbers = #tpu.dot_dimension_numbers<[1], [0], [0], [1], [0, 0, 1, 1], [], []>} : vector<8x64xbf16>, vector<64x192xbf16>, vector<8x192xf32> -> vector<8x192xf32>
    %253 = vector.broadcast %186 : vector<1x192xf32> to vector<8x192xf32>
    %254 = arith.addf %252, %253 : vector<8x192xf32>
    %255 = vector.extract_strided_slice %250 {offsets = [0, 0], sizes = [1, 128], strides = [1, 1]} : vector<1x192xf32> to vector<1x128xf32>
    %256 = vector.extract_strided_slice %254 {offsets = [0, 0], sizes = [8, 128], strides = [1, 1]} : vector<8x192xf32> to vector<8x128xf32>
    %257 = vector.broadcast %255 : vector<1x128xf32> to vector<8x128xf32>
    %258 = arith.addf %257, %256 : vector<8x128xf32>
    %259 = arith.negf %258 : vector<8x128xf32>
    %260 = math.exp %259 : vector<8x128xf32>
    %cst_72 = arith.constant 1.000000e+00 : f32
    %261 = vector.broadcast %cst_72 : f32 to vector<8x128xf32>
    %262 = arith.addf %261, %260 : vector<8x128xf32>
    %263 = arith.divf %261, %262 : vector<8x128xf32>
    %264 = vector.extract_strided_slice %263 {offsets = [0, 0], sizes = [8, 64], strides = [1, 1]} : vector<8x128xf32> to vector<8x64xf32>
    %265 = vector.extract_strided_slice %263 {offsets = [0, 64], sizes = [8, 64], strides = [1, 1]} : vector<8x128xf32> to vector<8x64xf32>
    %266 = vector.extract_strided_slice %250 {offsets = [0, 128], sizes = [1, 64], strides = [1, 1]} : vector<1x192xf32> to vector<1x64xf32>
    %267 = vector.extract_strided_slice %254 {offsets = [0, 128], sizes = [8, 64], strides = [1, 1]} : vector<8x192xf32> to vector<8x64xf32>
    %268 = arith.mulf %264, %267 : vector<8x64xf32>
    %269 = vector.broadcast %266 : vector<1x64xf32> to vector<8x64xf32>
    %270 = arith.addf %269, %268 : vector<8x64xf32>
    %271 = math.tanh %270 : vector<8x64xf32>
    %cst_73 = arith.constant 1.000000e+00 : f32
    %272 = vector.broadcast %cst_73 : f32 to vector<8x64xf32>
    %273 = arith.subf %272, %265 : vector<8x64xf32>
    %274 = arith.mulf %273, %271 : vector<8x64xf32>
    %275 = arith.mulf %265, %249 : vector<8x64xf32>
    %276 = arith.addf %274, %275 : vector<8x64xf32>
    %277 = math.tanh %276 : vector<8x64xf32>
    %278 = vector.extract_strided_slice %193 {offsets = [3, 0], sizes = [1, 192], strides = [1, 1]} : vector<6x192xf32> to vector<1x192xf32>
    %279 = arith.truncf %277 : vector<8x64xf32> to vector<8x64xbf16>
    %cst_74 = arith.constant dense<0.000000e+00> : vector<8x192xf32>
    %280 = tpu.matmul %279, %185, %cst_74 {dimension_numbers = #tpu.dot_dimension_numbers<[1], [0], [0], [1], [0, 0, 1, 1], [], []>} : vector<8x64xbf16>, vector<64x192xbf16>, vector<8x192xf32> -> vector<8x192xf32>
    %281 = vector.broadcast %186 : vector<1x192xf32> to vector<8x192xf32>
    %282 = arith.addf %280, %281 : vector<8x192xf32>
    %283 = vector.extract_strided_slice %278 {offsets = [0, 0], sizes = [1, 128], strides = [1, 1]} : vector<1x192xf32> to vector<1x128xf32>
    %284 = vector.extract_strided_slice %282 {offsets = [0, 0], sizes = [8, 128], strides = [1, 1]} : vector<8x192xf32> to vector<8x128xf32>
    %285 = vector.broadcast %283 : vector<1x128xf32> to vector<8x128xf32>
    %286 = arith.addf %285, %284 : vector<8x128xf32>
    %287 = arith.negf %286 : vector<8x128xf32>
    %288 = math.exp %287 : vector<8x128xf32>
    %cst_75 = arith.constant 1.000000e+00 : f32
    %289 = vector.broadcast %cst_75 : f32 to vector<8x128xf32>
    %290 = arith.addf %289, %288 : vector<8x128xf32>
    %291 = arith.divf %289, %290 : vector<8x128xf32>
    %292 = vector.extract_strided_slice %291 {offsets = [0, 0], sizes = [8, 64], strides = [1, 1]} : vector<8x128xf32> to vector<8x64xf32>
    %293 = vector.extract_strided_slice %291 {offsets = [0, 64], sizes = [8, 64], strides = [1, 1]} : vector<8x128xf32> to vector<8x64xf32>
    %294 = vector.extract_strided_slice %278 {offsets = [0, 128], sizes = [1, 64], strides = [1, 1]} : vector<1x192xf32> to vector<1x64xf32>
    %295 = vector.extract_strided_slice %282 {offsets = [0, 128], sizes = [8, 64], strides = [1, 1]} : vector<8x192xf32> to vector<8x64xf32>
    %296 = arith.mulf %292, %295 : vector<8x64xf32>
    %297 = vector.broadcast %294 : vector<1x64xf32> to vector<8x64xf32>
    %298 = arith.addf %297, %296 : vector<8x64xf32>
    %299 = math.tanh %298 : vector<8x64xf32>
    %cst_76 = arith.constant 1.000000e+00 : f32
    %300 = vector.broadcast %cst_76 : f32 to vector<8x64xf32>
    %301 = arith.subf %300, %293 : vector<8x64xf32>
    %302 = arith.mulf %301, %299 : vector<8x64xf32>
    %303 = arith.mulf %293, %277 : vector<8x64xf32>
    %304 = arith.addf %302, %303 : vector<8x64xf32>
    %305 = math.tanh %304 : vector<8x64xf32>
    %306 = vector.extract_strided_slice %193 {offsets = [4, 0], sizes = [1, 192], strides = [1, 1]} : vector<6x192xf32> to vector<1x192xf32>
    %307 = arith.truncf %305 : vector<8x64xf32> to vector<8x64xbf16>
    %cst_77 = arith.constant dense<0.000000e+00> : vector<8x192xf32>
    %308 = tpu.matmul %307, %185, %cst_77 {dimension_numbers = #tpu.dot_dimension_numbers<[1], [0], [0], [1], [0, 0, 1, 1], [], []>} : vector<8x64xbf16>, vector<64x192xbf16>, vector<8x192xf32> -> vector<8x192xf32>
    %309 = vector.broadcast %186 : vector<1x192xf32> to vector<8x192xf32>
    %310 = arith.addf %308, %309 : vector<8x192xf32>
    %311 = vector.extract_strided_slice %306 {offsets = [0, 0], sizes = [1, 128], strides = [1, 1]} : vector<1x192xf32> to vector<1x128xf32>
    %312 = vector.extract_strided_slice %310 {offsets = [0, 0], sizes = [8, 128], strides = [1, 1]} : vector<8x192xf32> to vector<8x128xf32>
    %313 = vector.broadcast %311 : vector<1x128xf32> to vector<8x128xf32>
    %314 = arith.addf %313, %312 : vector<8x128xf32>
    %315 = arith.negf %314 : vector<8x128xf32>
    %316 = math.exp %315 : vector<8x128xf32>
    %cst_78 = arith.constant 1.000000e+00 : f32
    %317 = vector.broadcast %cst_78 : f32 to vector<8x128xf32>
    %318 = arith.addf %317, %316 : vector<8x128xf32>
    %319 = arith.divf %317, %318 : vector<8x128xf32>
    %320 = vector.extract_strided_slice %319 {offsets = [0, 0], sizes = [8, 64], strides = [1, 1]} : vector<8x128xf32> to vector<8x64xf32>
    %321 = vector.extract_strided_slice %319 {offsets = [0, 64], sizes = [8, 64], strides = [1, 1]} : vector<8x128xf32> to vector<8x64xf32>
    %322 = vector.extract_strided_slice %306 {offsets = [0, 128], sizes = [1, 64], strides = [1, 1]} : vector<1x192xf32> to vector<1x64xf32>
    %323 = vector.extract_strided_slice %310 {offsets = [0, 128], sizes = [8, 64], strides = [1, 1]} : vector<8x192xf32> to vector<8x64xf32>
    %324 = arith.mulf %320, %323 : vector<8x64xf32>
    %325 = vector.broadcast %322 : vector<1x64xf32> to vector<8x64xf32>
    %326 = arith.addf %325, %324 : vector<8x64xf32>
    %327 = math.tanh %326 : vector<8x64xf32>
    %cst_79 = arith.constant 1.000000e+00 : f32
    %328 = vector.broadcast %cst_79 : f32 to vector<8x64xf32>
    %329 = arith.subf %328, %321 : vector<8x64xf32>
    %330 = arith.mulf %329, %327 : vector<8x64xf32>
    %331 = arith.mulf %321, %305 : vector<8x64xf32>
    %332 = arith.addf %330, %331 : vector<8x64xf32>
    %333 = math.tanh %332 : vector<8x64xf32>
    %334 = vector.extract_strided_slice %193 {offsets = [5, 0], sizes = [1, 192], strides = [1, 1]} : vector<6x192xf32> to vector<1x192xf32>
    %335 = arith.truncf %333 : vector<8x64xf32> to vector<8x64xbf16>
    %cst_80 = arith.constant dense<0.000000e+00> : vector<8x192xf32>
    %336 = tpu.matmul %335, %185, %cst_80 {dimension_numbers = #tpu.dot_dimension_numbers<[1], [0], [0], [1], [0, 0, 1, 1], [], []>} : vector<8x64xbf16>, vector<64x192xbf16>, vector<8x192xf32> -> vector<8x192xf32>
    %337 = vector.broadcast %186 : vector<1x192xf32> to vector<8x192xf32>
    %338 = arith.addf %336, %337 : vector<8x192xf32>
    %339 = vector.extract_strided_slice %334 {offsets = [0, 0], sizes = [1, 128], strides = [1, 1]} : vector<1x192xf32> to vector<1x128xf32>
    %340 = vector.extract_strided_slice %338 {offsets = [0, 0], sizes = [8, 128], strides = [1, 1]} : vector<8x192xf32> to vector<8x128xf32>
    %341 = vector.broadcast %339 : vector<1x128xf32> to vector<8x128xf32>
    %342 = arith.addf %341, %340 : vector<8x128xf32>
    %343 = arith.negf %342 : vector<8x128xf32>
    %344 = math.exp %343 : vector<8x128xf32>
    %cst_81 = arith.constant 1.000000e+00 : f32
    %345 = vector.broadcast %cst_81 : f32 to vector<8x128xf32>
    %346 = arith.addf %345, %344 : vector<8x128xf32>
    %347 = arith.divf %345, %346 : vector<8x128xf32>
    %348 = vector.extract_strided_slice %347 {offsets = [0, 0], sizes = [8, 64], strides = [1, 1]} : vector<8x128xf32> to vector<8x64xf32>
    %349 = vector.extract_strided_slice %347 {offsets = [0, 64], sizes = [8, 64], strides = [1, 1]} : vector<8x128xf32> to vector<8x64xf32>
    %350 = vector.extract_strided_slice %334 {offsets = [0, 128], sizes = [1, 64], strides = [1, 1]} : vector<1x192xf32> to vector<1x64xf32>
    %351 = vector.extract_strided_slice %338 {offsets = [0, 128], sizes = [8, 64], strides = [1, 1]} : vector<8x192xf32> to vector<8x64xf32>
    %352 = arith.mulf %348, %351 : vector<8x64xf32>
    %353 = vector.broadcast %350 : vector<1x64xf32> to vector<8x64xf32>
    %354 = arith.addf %353, %352 : vector<8x64xf32>
    %355 = math.tanh %354 : vector<8x64xf32>
    %cst_82 = arith.constant 1.000000e+00 : f32
    %356 = vector.broadcast %cst_82 : f32 to vector<8x64xf32>
    %357 = arith.subf %356, %349 : vector<8x64xf32>
    %358 = arith.mulf %357, %355 : vector<8x64xf32>
    %359 = arith.mulf %349, %333 : vector<8x64xf32>
    %360 = arith.addf %358, %359 : vector<8x64xf32>
    %361 = math.tanh %360 : vector<8x64xf32>
    %362 = tpu.concatenate %221, %249, %277, %305, %333, %361 in 0 : vector<8x64xf32>, vector<8x64xf32>, vector<8x64xf32>, vector<8x64xf32>, vector<8x64xf32>, vector<8x64xf32> -> vector<48x64xf32>
    %c0_83 = arith.constant 0 : index
    %c0_84 = arith.constant 0 : index
    %363 = vector.load %arg10[%c0_83, %c0_84] : memref<64x2xf32, #tpu.memory_space<vmem>>, vector<64x2xf32>
    %cst_85 = arith.constant dense<0.000000e+00> : vector<48x2xf32>
    %364 = tpu.matmul %362, %363, %cst_85 {dimension_numbers = #tpu.dot_dimension_numbers<[1], [0], [0], [1], [0, 0, 1, 1], [], []>} : vector<48x64xf32>, vector<64x2xf32>, vector<48x2xf32> -> vector<48x2xf32>
    %c0_86 = arith.constant 0 : index
    %c0_87 = arith.constant 0 : index
    %365 = vector.load %arg11[%c0_86, %c0_87] : memref<1x2xf32, #tpu.memory_space<vmem>>, vector<1x2xf32>
    %366 = vector.broadcast %365 : vector<1x2xf32> to vector<48x2xf32>
    %367 = arith.addf %364, %366 : vector<48x2xf32>
    %cst_88 = arith.constant dense<0xFF800000> : vector<48xf32>
    %368 = vector.multi_reduction <maximumf>, %367, %cst_88 [1] : vector<48x2xf32> to vector<48xf32>
    %369 = vector.shape_cast %368 : vector<48xf32> to vector<48x1xf32>
    %370 = vector.broadcast %369 : vector<48x1xf32> to vector<48x2xf32>
    %371 = arith.subf %367, %370 : vector<48x2xf32>
    %372 = math.exp %371 : vector<48x2xf32>
    %cst_89 = arith.constant dense<0.000000e+00> : vector<48xf32>
    %373 = vector.multi_reduction <add>, %372, %cst_89 [1] : vector<48x2xf32> to vector<48xf32>
    %374 = vector.shape_cast %373 : vector<48xf32> to vector<48x1xf32>
    %375 = math.log %374 : vector<48x1xf32>
    %376 = arith.addf %369, %375 : vector<48x1xf32>
    %377 = vector.broadcast %376 : vector<48x1xf32> to vector<48x2xf32>
    %378 = arith.subf %367, %377 : vector<48x2xf32>
    %c0_90 = arith.constant 0 : index
    %c0_91 = arith.constant 0 : index
    %379 = vector.load %arg12[%c0_90, %c0_91] : memref<48x2xf32, #tpu.memory_space<vmem>>, vector<48x2xf32>
    tpu.vector_store %arg12[%c0_90, %c0_91], %378 {strides = array<i32>} : memref<48x2xf32, #tpu.memory_space<vmem>>, vector<48x2xf32>,
    return
  }
}

</mosaic_0001>

<bundles_post_ra>
// kernel: tpu_custom_call.1
= control target key start
LH: loop header
LB: loop body
LE: loop exit
PB: predicated region body
PF: predicated region fallthrough
CT: control target
= control target key end

     0   :  { %17 = vsyncpa [#allocation5], 0  ;;  %s2892_s0 = inlined_call_operand.vmem [shape: f32[64,32], index: 0, kind: input, shape index: {}]   ;;  %s2893_s1 = inlined_call_operand.vmem [shape: f32[6,32], index: 1, kind: input, shape index: {}]   ;;  %s2894_s2 = inlined_call_operand.vmem [shape: f32[32,256], index: 2, kind: input, shape index: {}]   ;;  %s2895_s3 = inlined_call_operand.vmem [shape: f32[32,256], index: 3, kind: input, shape index: {}]   ;;  %s2896_s4 = inlined_call_operand.hbm [shape: bf16[64,256], index: 4, kind: input, shape index: {}]   ;;  %s2897_s5 = inlined_call_operand.vmem [shape: f32[1,256], index: 5, kind: input, shape index: {}]   ;;  %s2898_s6 = inlined_call_operand.hbm [shape: f32[32,192], index: 6, kind: input, shape index: {}]   ;;  %s2899_s7 = inlined_call_operand.hbm [shape: bf16[64,192], index: 7, kind: input, shape index: {}]   ;;  %s2900_s8 = inlined_call_operand.vmem [shape: f32[1,192], index: 8, kind: input, shape index: {}]   ;;  %s2901_s9 = inlined_call_operand.vmem [shape: f32[1,192], index: 9, kind: input, shape index: {}]   ;;  %s2902_s10 = inlined_call_operand.vmem [shape: f32[64,2], index: 10, kind: input, shape index: {}]   ;;  %s2903_s11 = inlined_call_operand.vmem [shape: f32[1,2], index: 11, kind: input, shape index: {}]   ;;  %s2904_s12 = inlined_call_operand.vmem [shape: f32[48,2], index: 12, kind: output, shape index: {}]  }
   0x1   :  { %18 = vsyncpa [#allocation7], 0  ;;  %s46_s23 = sshll.u32 %s2898_s6, 4  ;;  %s2229_s24 = smov [#allocation6]   ;;  %s47_s23 = int_to_ptr.hbm [resolvable:$true] %s46_s23 }
   0x2   :  { %s48_s25 = sshll.u32 %s2229_s24, 4  ;;  %s31_s28 = sshll.u32 %s2896_s4, 4  ;;  %s49_s25 = int_to_ptr.vmem [resolvable:$true] %s48_s25  ;;  %s32_s28 = int_to_ptr.hbm [resolvable:$true] %s31_s28 }
   0x3   :  { %s2230_s29 = smov 256   ;;  %s2231_s30 = smov 16  }
   0x4   :  { %54 = dma.hbm_to_vmem [thread:$0]  %s47_s23, 1024, %s49_s25, [#allocation7], %s2230_s29, %s2230_s29, %s2231_s30  }
   0x5   :  { %s2232_s13 = smov [#allocation4]   ;;  %s2233_s15 = smov 128  }
   0x6   :  { %s33_s14 = sshll.u32 %s2232_s13, 4  ;;  %s2234_s16 = smov 8   ;;  %s34_s14 = int_to_ptr.vmem [resolvable:$true] %s33_s14 }
   0x7   :  { %39 = dma.hbm_to_vmem [thread:$0]  %s32_s28, 1024, %s34_s14, [#allocation5], %s2233_s15, %s2233_s15, %s2234_s16  }
   0x8   :  { %s59_s18 = sshll.u32 %s2899_s7, 4  ;;  %s2235_s19 = smov [#allocation8]   ;;  %s60_s18 = int_to_ptr.hbm [resolvable:$true] %s59_s18 }
   0x9   :  { %s61_s20 = sshll.u32 %s2235_s19, 4  ;;  %s62_s20 = int_to_ptr.vmem [resolvable:$true] %s61_s20 }
   0xa   :  { %67 = dma.hbm_to_vmem [thread:$0]  %s60_s18, 1024, %s62_s20, [#allocation7], %s2233_s15, %s2233_s15, %s2234_s16  }
   0xb   :  { %2225 = dma.done.wait [#allocation5], 1024  }
   0xc   :  { %2226 = vsyncadd [#allocation5], 4294966272 }
   0xd   :  { %2227 = dma.done.wait [#allocation7], 2048  }
   0xe   :  { %2228 = vsyncadd [#allocation7], 4294965248  ;;  %v111_v0 = vld [vmem:[%s2894_s2 + $0x30] sm:$0xff]  ;;  %v109_v1 = vld [vmem:[%s2894_s2 + $0x20] sm:$0xff]  ;;  %vm119_vm0 = vcmask 261120   ;;  %vm455_vm9 = vcmask 523264  }
   0xf   :  { %1950 = vmatpush.msra.mxu1 %v111_v0  ;;  %1951 = vmatpush.msra.mxu2 %v111_v0  ;;  %v93_v2 = vld [vmem:[%s2892_s0 + $0x20] sm:$0xff]  ;;  %v95_v3 = vld [vmem:[%s2892_s0 + $0x30] sm:$0xff]  ;;  %v249_v5 = vld [vmem:[%s2895_s3 + $0x38] sm:$0xff] }
  0x10   :  { %v107_v4 = vld [vmem:[%s2894_s2 + $0x10] sm:$0xff]  ;;  %1967 = vtanh.f32 %v93_v2  ;;  %156 = vmatpush.msra.mxu0 %v111_v0  ;;  %v247_v6 = vld [vmem:[%s2895_s3 + $0x28] sm:$0xff]  ;;  %v105_v7 = vld [vmem:[%s2894_s2] sm:$0xff]  ;;  %303 = vmatpush.msra.mxu3 %v249_v5 }
  0x11   :  { %1952 = vmatpush.msra.mxu1 %v109_v1  ;;  %1953 = vmatpush.msra.mxu2 %v109_v1  ;;  %1969 = vtanh.f32 %v95_v3  ;;  %v112_v8 = vld [vmem:[%s2894_s2 + $0x38] sm:$0xff]  ;;  %v94_v9 = vld [vmem:[%s2892_s0 + $0x28] sm:$0xff]  ;;  %v248_v10 = vld [vmem:[%s2895_s3 + $0x30] sm:$0xff] }
  0x12   :  { %157 = vmatpush.msra.mxu0 %v109_v1  ;;  %304 = vmatpush.msra.mxu3 %v247_v6  ;;  %v96_v11 = vld [vmem:[%s2892_s0 + $0x38] sm:$0xff]  ;;  %v89_v13 = vld [vmem:[%s2892_s0] sm:$0xff]  ;;  %v110_v14 = vld [vmem:[%s2894_s2 + $0x28] sm:$0xff] }
  0x13   :  { %1954 = vmatpush.msra.mxu1 %v107_v4  ;;  %1955 = vmatpush.msra.mxu2 %v107_v4  ;;  %v245_v12 = vld [vmem:[%s2895_s3 + $0x18] sm:$0xff]  ;;  %1971 = vtanh.f32 %v89_v13  ;;  %v246_v16 = vld [vmem:[%s2895_s3 + $0x20] sm:$0xff]  ;;  %v243_v17 = vld [vmem:[%s2895_s3 + $0x8] sm:$0xff] }
  0x14   :  { %158 = vmatpush.msra.mxu0 %v107_v4  ;;  %1973 = vtanh.f32 %v94_v9  ;;  %v108_v19 = vld [vmem:[%s2894_s2 + $0x18] sm:$0xff]  ;;  %305 = vmatpush.msra.mxu3 %v245_v12  ;;  %v244_v20 = vld [vmem:[%s2895_s3 + $0x10] sm:$0xff]  ;;  %v106_v21 = vld [vmem:[%s2894_s2 + $0x8] sm:$0xff] }
  0x15   :  { %1956 = vmatpush.msra.mxu1 %v105_v7  ;;  %1957 = vmatpush.msra.mxu2 %v105_v7  ;;  %1975 = vtanh.f32 %v96_v11  ;;  %v242_v22 = vld [vmem:[%s2895_s3] sm:$0xff]  ;;  %v90_v23 = vld [vmem:[%s2892_s0 + $0x8] sm:$0xff]  ;;  %v91_v27 = vld [vmem:[%s2892_s0 + $0x10] sm:$0xff] }
  0x16   :  { %v1968_v15 = vpop.eup %1967  ;;  %306 = vmatpush.msra.mxu3 %v243_v17  ;;  %159 = vmatpush.msra.mxu0 %v105_v7  ;;  %1977 = vtanh.f32 %v90_v23  ;;  %v92_v29 = vld [vmem:[%s2892_s0 + $0x18] sm:$0xff]  ;;  %v113_v35 = vld [vmem:[%s2897_s5] sm:$0x3]  ;;  %v1940_v43 = vld [vmem:[#allocation4 + $0x34] sm:$0xf]  ;;  %s2236_s5 = smov 64  }
  0x17   :  { %197 = vmatpush.msrb.mxu1 %v112_v8  ;;  %262 = vmatpush.msrb.mxu2 %v248_v10  ;;  %v1970_v18 = vpop.eup %1969  ;;  %1979 = vtanh.f32 %v91_v27  ;;  %v2420_v36 = vperm.slane %v113_v35, 1  ;;  %v1844_v44 = vld [vmem:[#allocation4 + $0x38] sm:$0xf0]  ;;  %v1938_v45 = vld [vmem:[#allocation4 + $0x24] sm:$0xf]  ;;  %v2425_v48 = vperm.slane %v113_v35, 0 }
  0x18   :  { %1786 = vmatmul.msk.f32.vlgmr.msra.gmra.mxu1 %vm119_vm0, %v1968_v15  ;;  %1788 = vmatmul.msk.f32.vlgmr.msra.gmra.mxu2 %vm119_vm0, %v1970_v18  ;;  %1981 = vtanh.f32 %v92_v29  ;;  %v2423_v46 = vor.u32 %v1940_v43, %v1844_v44  ;;  %v1836_v47 = vld [vmem:[#allocation4 + $0x28] sm:$0xf0]  ;;  %v1842_v49 = vld [vmem:[#allocation4 + $0x30] sm:$0xf]  ;;  %v1941_v52 = vld [vmem:[#allocation4 + $0x34] sm:$0xf0] }
  0x19   :  { %198 = vmatpush.msrb.mxu1 %v110_v14  ;;  %263 = vmatpush.msrb.mxu2 %v246_v16  ;;  %v1972_v24 = vpop.eup %1971  ;;  %v2428_v51 = vor.u32 %v1938_v45, %v1836_v47  ;;  %v1936_v54 = vld [vmem:[#allocation4 + $0x14] sm:$0xf]  ;;  %v1828_v55 = vld [vmem:[#allocation4 + $0x18] sm:$0xf0]  ;;  %v2433_v56 = vor.u32 %v1941_v52, %v1842_v49  ;;  %v1934_v60 = vld [vmem:[#allocation4 + $0x4] sm:$0xf] }
  0x1a   :  { %v1974_v25 = vpop.eup %1973  ;;  %1806 = vmatmul.msk.f32.vlgmr.msra.gmra.mxu3 %vm119_vm0, %v1972_v24  ;;  %1782 = vmatmul.msk.f32.vlgmr.msra.gmra.mxu0 %vm119_vm0, %v1972_v24  ;;  %v2438_v58 = vor.u32 %v1936_v54, %v1828_v55  ;;  %v1820_v61 = vld [vmem:[#allocation4 + $0x8] sm:$0xf0]  ;;  %v1834_v12 = vld [vmem:[#allocation4 + $0x20] sm:$0xf]  ;;  %v1939_v13 = vld [vmem:[#allocation4 + $0x24] sm:$0xf0] }
  0x1b   :  { %199 = vmatpush.msrb.mxu1 %v108_v19  ;;  %264 = vmatpush.msrb.mxu2 %v244_v20  ;;  %v1976_v26 = vpop.eup %1975  ;;  %v2444_v62 = vor.u32 %v1934_v60, %v1820_v61  ;;  %v2464_v14 = vor.u32 %v1939_v13, %v1834_v12  ;;  %v1937_v16 = vld [vmem:[#allocation4 + $0x14] sm:$0xf0]  ;;  %v1935_v19 = vld [vmem:[#allocation4 + $0x4] sm:$0xf0] }
  0x1c   :  { %v1978_v28 = vpop.eup %1977  ;;  %572 = vmatpush.bf16.msrb.mxu3 %v2423_v46  ;;  %463 = vmatpush.bf16.msrb.mxu0 %v2433_v56 }
  0x1d   :  { %200 = vmatpush.msrb.mxu1 %v106_v21  ;;  %265 = vmatpush.msrb.mxu2 %v242_v22  ;;  %v1980_v30 = vpop.eup %1979 }
  0x1e   :  { %v1982_v31 = vpop.eup %1981 }
  0x1f   :  { %476 = vmatpush.bf16.msra.mxu1 %v2423_v46  ;;  %559 = vmatpush.bf16.msra.mxu2 %v2433_v56 }
  0x20   :  { %1787 = vmatmul.msk.f32.gmra.mxu1 %vm119_vm0, %v1974_v25  ;;  %1789 = vmatmul.msk.f32.gmra.mxu2 %vm119_vm0, %v1976_v26 }
  0x21   :  { %573 = vmatpush.bf16.msrb.mxu3 %v2428_v51  ;;  %464 = vmatpush.bf16.msrb.mxu0 %v2464_v14 }
  0x22   :  { %1807 = vmatmul.msk.f32.gmra.mxu3 %vm119_vm0, %v1978_v28  ;;  %1783 = vmatmul.msk.f32.gmra.mxu0 %vm119_vm0, %v1978_v28 }
  0x23   :  { %477 = vmatpush.bf16.msra.mxu1 %v2428_v51  ;;  %560 = vmatpush.bf16.msra.mxu2 %v2464_v14 }
  0x25   :  { %574 = vmatpush.bf16.msrb.mxu3 %v2438_v58 }
  0x27   :  { %478 = vmatpush.bf16.msra.mxu1 %v2438_v58 }
  0x28   :  { %1790 = vmatmul.msk.f32.vlgmr.msrb.gmra.mxu1 %vm119_vm0, %v1972_v24  ;;  %1798 = vmatmul.msk.f32.vlgmr.msrb.gmra.mxu2 %vm119_vm0, %v1972_v24 }
  0x29   :  { %575 = vmatpush.bf16.msrb.mxu3 %v2444_v62 }
  0x2a   :  { %1808 = vmatmul.msk.f32.gmra.mxu3 %vm119_vm0, %v1980_v30  ;;  %1784 = vmatmul.msk.f32.gmra.mxu0 %vm119_vm0, %v1980_v30 }
  0x2b   :  { %479 = vmatpush.bf16.msra.mxu1 %v2444_v62 }
  0x2d   :  { %756 = vmatpush.bf16.msra.mxu3 %v2423_v46 }
  0x2f   :  { %664 = vmatpush.bf16.msrb.mxu1 %v2423_v46 }
  0x30   :  { %1791 = vmatmul.msk.f32.gmra.mxu1 %vm119_vm0, %v1978_v28  ;;  %1799 = vmatmul.msk.f32.gmra.mxu2 %vm119_vm0, %v1978_v28 }
  0x31   :  { %757 = vmatpush.bf16.msra.mxu3 %v2428_v51 }
  0x32   :  { %1809 = vmatmul.msk.f32.gmra.mxu3 %vm119_vm0, %v1982_v31  ;;  %1785 = vmatmul.msk.f32.gmra.mxu0 %vm119_vm0, %v1982_v31 }
  0x33   :  { %665 = vmatpush.bf16.msrb.mxu1 %v2428_v51 }
  0x35   :  { %758 = vmatpush.bf16.msra.mxu3 %v2438_v58 }
  0x37   :  { %666 = vmatpush.bf16.msrb.mxu1 %v2438_v58 }
  0x38   :  { %1792 = vmatmul.msk.f32.gmra.mxu1 %vm119_vm0, %v1980_v30  ;;  %1800 = vmatmul.msk.f32.gmra.mxu2 %vm119_vm0, %v1980_v30 }
  0x39   :  { %759 = vmatpush.bf16.msra.mxu3 %v2444_v62 }
  0x3a   :  { %1810 = vmatmul.msk.f32.gmra.mxu3 %vm119_vm0, %v1968_v15 }
  0x3b   :  { %667 = vmatpush.bf16.msrb.mxu1 %v2444_v62 }
  0x40   :  { %1793 = vmatmul.msk.f32.gmra.mxu1 %vm119_vm0, %v1982_v31  ;;  %1801 = vmatmul.msk.f32.gmra.mxu2 %vm119_vm0, %v1982_v31 }
  0x42   :  { %1811 = vmatmul.msk.f32.gmra.mxu3 %vm119_vm0, %v1974_v25 }
  0x48   :  { %1794 = vmatmul.msk.f32.gmra.mxu1 %vm119_vm0, %v1968_v15  ;;  %1802 = vmatmul.msk.f32.gmra.mxu2 %vm119_vm0, %v1968_v15  ;;  %v1826_v15 = vld [vmem:[#allocation4 + $0x10] sm:$0xf] }
  0x49   :  { %v2467_v17 = vor.u32 %v1937_v16, %v1826_v15 }
  0x4a   :  { %1812 = vmatmul.msk.f32.gmra.mxu3 %vm119_vm0, %v1970_v18 }
  0x4b   :  { %465 = vmatpush.bf16.msrb.mxu0 %v2467_v17  ;;  %561 = vmatpush.bf16.msra.mxu2 %v2467_v17 }
  0x50   :  { %1795 = vmatmul.msk.f32.gmra.mxu1 %vm119_vm0, %v1974_v25  ;;  %1803 = vmatmul.msk.f32.gmra.mxu2 %vm119_vm0, %v1974_v25 }
  0x52   :  { %1813 = vmatmul.msk.f32.gmra.mxu3 %vm119_vm0, %v1976_v26 }
  0x58   :  { %1796 = vmatmul.msk.f32.gmra.mxu1 %vm119_vm0, %v1970_v18  ;;  %1804 = vmatmul.msk.f32.gmra.mxu2 %vm119_vm0, %v1970_v18  ;;  %v1818_v18 = vld [vmem:[#allocation4] sm:$0xf] }
  0x59   :  { %v2471_v21 = vor.u32 %v1935_v19, %v1818_v18 }
  0x5b   :  { %466 = vmatpush.bf16.msrb.mxu0 %v2471_v21  ;;  %562 = vmatpush.bf16.msra.mxu2 %v2471_v21 }
  0x5f   :  { %651 = vmatpush.bf16.msra.mxu0 %v2433_v56  ;;  %743 = vmatpush.bf16.msrb.mxu2 %v2433_v56 }
  0x60   :  { %1797 = vmatmul.msk.f32.gmra.mxu1 %vm119_vm0, %v1976_v26  ;;  %1805 = vmatmul.msk.f32.gmra.mxu2 %vm119_vm0, %v1976_v26 }
  0x63   :  { %652 = vmatpush.bf16.msra.mxu0 %v2464_v14  ;;  %744 = vmatpush.bf16.msrb.mxu2 %v2464_v14 }
  0x67   :  { %653 = vmatpush.bf16.msra.mxu0 %v2467_v17  ;;  %745 = vmatpush.bf16.msrb.mxu2 %v2467_v17 }
  0x6b   :  { %654 = vmatpush.bf16.msra.mxu0 %v2471_v21  ;;  %746 = vmatpush.bf16.msrb.mxu2 %v2471_v21 }
  0x95   :  { %v2415_v32 = vpop.f32.mrf.mxu1 }
  0x97   :  { %v161_v5 = vpop.f32.mrf.mxu0 }
  0x98   :  { %v162_v6 = vadd.f32 %v161_v5, %v2425_v48 }
  0x9b   :  { %v179_v33 = vpop.f32.mrf.mxu2 }
  0x9c   :  { %v180_v63 = vadd.f32 %v179_v33, %v2425_v48 }
  0x9d   :  { %v176_v34 = vpop.f32.mrf.mxu1  ;;  %v308_v39 = vpop.f32.mrf.mxu3 }
  0x9e   :  { %v177_v2 = vadd.f32 %v176_v34, %v2425_v48 }
  0xa3   :  { %v182_v37 = vpop.f32.mrf.mxu2 }
  0xa4   :  { %v183_v53 = vadd.f32 %v182_v37, %v2425_v48 }
  0xa5   :  { %v202_v38 = vpop.f32.mrf.mxu1  ;;  %v2478_v25 = vpop.f32.mrf.mxu3 }
  0xa6   :  { %v203_v40 = vadd.f32 %v202_v38, %v2420_v36 }
  0xa8   :  { %v361_v41 = vadd.f32 %v308_v39, %v203_v40 }
  0xaa   :  { %1983 = vtanh.f32 %v361_v41  ;;  %v1815_v9 = vmul.f32 -1.442695, %v361_v41 }
  0xab   :  { %v267_v42 = vpop.f32.mrf.mxu2 }
  0xac   :  { %v360_v7 = vadd.f32 %v267_v42, %v162_v6 }
  0xad   :  { %v2484_v30 = vpop.f32.mrf.mxu1  ;;  %v2486_v31 = vpop.f32.mrf.mxu3 }
  0xae   :  { %v1814_v8 = vmul.f32 -1.442695, %v360_v7 }
  0xb0   :  { %v1984_v50 = vpop.eup %1983  ;;  %1985 = vpow2.f32 %v1814_v8 }
  0xb1   :  { %402 = vrot.lane.b32.xlu0 %v1984_v50, %s2236_s5  ;;  %1987 = vpow2.f32 %v1815_v9  ;;  %v164_v9 = vpop.f32.mrf.mxu0 }
  0xb3   :  { %v270_v57 = vpop.f32.mrf.mxu2 }
  0xb4   :  { %v2441_v59 = vadd.f32 %v270_v57, %v183_v53 }
  0xb5   :  { %v2490_v41 = vpop.f32.mrf.mxu3  ;;  %v208_v44 = vpop.f32.mrf.mxu1 }
  0xb6   :  { %v1986_v10 = vpop.eup %1985  ;;  %v209_v5 = vadd.f32 %v208_v44, %v2420_v36 }
  0xb7   :  { %v368_v11 = vadd.f32 1.0, %v1986_v10  ;;  %v1988_v20 = vpop.eup %1987 }
  0xb8   :  { %v369_v22 = vadd.f32 1.0, %v1988_v20 }
  0xb9   :  { %1989 = vrcp.f32 %v368_v11  ;;  %vm375_vm1 = vweird.f32 %v368_v11  ;;  %v381_v33 = vand.u32 2147483648, %v368_v11  ;;  %v379_v35 = vand.u32 2147483647, %v368_v11 }
  0xba   :  { %1991 = vrcp.f32 %v369_v22  ;;  %v396_v49 = vand.u32 2147483648, %v369_v22  ;;  %vm390_vm6 = vweird.f32 %v369_v22  ;;  %v394_v50 = vand.u32 2147483647, %v369_v22 }
  0xbb   :  { %v273_v0 = vpop.f32.mrf.mxu2  ;;  %v382_v38 = vor.u32 1.1754944e-38, %v381_v33  ;;  %vm380_vm4 = vcmp.eq.f32.partialorder %v379_v35, 8.507059e+37 }
  0xbc   :  { %v2450_v1 = vadd.f32 %v273_v0, %v180_v63  ;;  %v397_v54 = vor.u32 1.1754944e-38, %v396_v49  ;;  %vm395_vm8 = vcmp.eq.f32.partialorder %v394_v50, 8.507059e+37 }
  0xbd   :  { %v2493_v53 = vpop.f32.mrf.mxu3  ;;  %v211_v61 = vpop.f32.mrf.mxu1 }
  0xbe   :  { %v212_v63 = vadd.f32 %v211_v61, %v2420_v36 }
  0xbf   :  { %v1990_v23 = vpop.eup %1989 }
  0xc0   :  { %v371_v24 = vmul.f32 %v1990_v23, %v368_v11  ;;  %v1992_v27 = vpop.eup %1991  ;;  %vm376_vm2 = vweird.f32 %v1990_v23  ;;  %v167_v11 = vpop.f32.mrf.mxu0 }
  0xc1   :  { %v386_v29 = vmul.f32 %v1992_v27, %v369_v22  ;;  %vm377_vm3 = vmor %vm375_vm1, %vm376_vm2  ;;  %vm391_vm5 = vweird.f32 %v1992_v27  ;;  %v168_v12 = vadd.f32 %v167_v11, %v2425_v48 }
  0xc2   :  { %v372_v26 = vsub.f32 1.0, %v371_v24  ;;  %vm392_vm7 = vmor %vm390_vm6, %vm391_vm5 }
  0xc3   :  { %v276_v3 = vpop.f32.mrf.mxu2  ;;  %v387_v37 = vsub.f32 1.0, %v386_v29 }
  0xc4   :  { %v2457_v4 = vadd.f32 %v276_v3, %v177_v2  ;;  %v373_v28 = vmul.f32 %v1990_v23, %v372_v26 }
  0xc5   :  { %v388_v40 = vmul.f32 %v1992_v27, %v387_v37  ;;  %v323_v2 = vpop.f32.mrf.mxu3  ;;  %v2522_v16 = vpop.f32.mrf.mxu1  ;;  %v165_v37 = vadd.f32 %v164_v9, %v2425_v48 }
  0xc6   :  { %v374_v34 = vadd.f32 %v1990_v23, %v373_v28  ;;  %v2502_v3 = vadd.f32 %v323_v2, %v212_v63 }
  0xc7   :  { %v389_v47 = vadd.f32 %v1992_v27, %v388_v40 }
  0xc8   :  { %v378_v39 = vsel %vm377_vm3, %v1990_v23, %v374_v34  ;;  %v2528_v20 = vpop.f32.mrf.mxu0  ;;  %v206_v23 = vadd.f32 %v2484_v30, %v2420_v36 }
  0xc9   :  { %v383_v43 = vsel %vm380_vm4, %v382_v38, %v378_v39  ;;  %v393_v52 = vsel %vm392_vm7, %v1992_v27, %v389_v47 }
  0xca   :  { %v398_v57 = vsel %vm395_vm8, %v397_v54, %v393_v52 }
  0xcb   :  { %v2515_v8 = vpop.f32.mrf.mxu2 }
  0xcd   :  { %v326_v6 = vpop.f32.mrf.mxu3  ;;  %v2524_v18 = vpop.f32.mrf.mxu1 }
  0xce   :  { %v2509_v7 = vadd.f32 %v326_v6, %v209_v5 }
  0xd3   :  { %v2517_v10 = vpop.f32.mrf.mxu2 }
  0xd5   :  { %v2526_v19 = vpop.f32.mrf.mxu1  ;;  %v329_v24 = vpop.f32.mrf.mxu3 }
  0xd6   :  { %v413_v26 = vadd.f32 %v329_v24, %v206_v23 }
  0xdb   :  { %v285_v13 = vpop.f32.mrf.mxu2 }
  0xdc   :  { %v2520_v15 = vadd.f32 %v285_v13, %v168_v12 }
  0xdd   :  { %v2530_v22 = vpop.f32.mrf.mxu1 }
  0xe3   :  { %v288_v38 = vpop.f32.mrf.mxu2 }
  0xe4   :  { %v412_v39 = vadd.f32 %v288_v38, %v165_v37 }
 0x123   :  { %v403_v42 = vpop.permute.xlu0 %402 }
 0x124   :  { %v405_v45 = vmul.f32 %v403_v42, %v383_v43 }
 0x126   :  { %1993 = vtanh.f32 %v405_v45  ;;  %525 = vrot.lane.b32.xlu1 %v405_v45, %s2236_s5 }
 0x12c   :  { %v1994_v55 = vpop.eup %1993 }
 0x12d   :  { %v2495_v60 = vmul.f32 %v1994_v55, %v398_v57 }
 0x12f   :  { %v414_v0 = vpack.c.bf16 %v2495_v60, %v2495_v60 }
 0x131   :  { %1848 = vmatmul.msk.bf16.vlgmr.msrb.gmra.mxu0 %vm455_vm9, %v414_v0  ;;  %1849 = vmatmul.msk.bf16.vlgmr.msra.gmra.mxu1 %vm455_vm9, %v414_v0 }
 0x132   :  { %848 = vmatpush.bf16.msra.mxu1 %v2423_v46  ;;  %835 = vmatpush.bf16.msrb.mxu0 %v2433_v56 }
 0x136   :  { %849 = vmatpush.bf16.msra.mxu1 %v2428_v51  ;;  %836 = vmatpush.bf16.msrb.mxu0 %v2464_v14 }
 0x13a   :  { %850 = vmatpush.bf16.msra.mxu1 %v2438_v58  ;;  %837 = vmatpush.bf16.msrb.mxu0 %v2467_v17 }
 0x13e   :  { %851 = vmatpush.bf16.msra.mxu1 %v2444_v62  ;;  %838 = vmatpush.bf16.msrb.mxu0 %v2471_v21 }
 0x198   :  { %v526_v2 = vpop.permute.xlu1 %525 }
 0x1ae   :  { %v468_v27 = vpop.f32.mrf.mxu0  ;;  %v481_v28 = vpop.f32.mrf.mxu1 }
 0x1af   :  { %v482_v29 = vadd.f32 %v481_v28, %v413_v26  ;;  %v469_v40 = vadd.f32 %v468_v27, %v412_v39 }
 0x1b1   :  { %1995 = vtanh.f32 %v482_v29  ;;  %v1850_v42 = vmul.f32 -1.442695, %v469_v40  ;;  %v1851_v12 = vmul.f32 -1.442695, %v482_v29 }
 0x1b3   :  { %1997 = vpow2.f32 %v1850_v42 }
 0x1b6   :  { %v470_v33 = vpop.f32.mrf.mxu0  ;;  %v483_v34 = vpop.f32.mrf.mxu1 }
 0x1b7   :  { %v1996_v35 = vpop.eup %1995 }
 0x1b8   :  { %530 = vrot.lane.b32.xlu0 %v1996_v35, %s2236_s5 }
 0x1b9   :  { %v1998_v43 = vpop.eup %1997 }
 0x1ba   :  { %v491_v30 = vadd.f32 1.0, %v1998_v43 }
 0x1bc   :  { %1999 = vrcp.f32 %v491_v30  ;;  %v504_v52 = vand.u32 2147483648, %v491_v30  ;;  %vm498_vm11 = vweird.f32 %v491_v30  ;;  %v502_v54 = vand.u32 2147483647, %v491_v30 }
 0x1be   :  { %v505_v57 = vor.u32 1.1754944e-38, %v504_v52  ;;  %vm503_vm13 = vcmp.eq.f32.partialorder %v502_v54, 8.507059e+37 }
 0x1c2   :  { %v2000_v44 = vpop.eup %1999 }
 0x1c3   :  { %v494_v45 = vmul.f32 %v2000_v44, %v491_v30  ;;  %vm499_vm10 = vweird.f32 %v2000_v44 }
 0x1c4   :  { %vm500_vm12 = vmor %vm498_vm11, %vm499_vm10 }
 0x1c5   :  { %v495_v47 = vsub.f32 1.0, %v494_v45 }
 0x1c7   :  { %v496_v49 = vmul.f32 %v2000_v44, %v495_v47 }
 0x1c9   :  { %v497_v50 = vadd.f32 %v2000_v44, %v496_v49 }
 0x1cb   :  { %v501_v55 = vsel %vm500_vm12, %v2000_v44, %v497_v50 }
 0x1cc   :  { %v506_v63 = vsel %vm503_vm13, %v505_v57, %v501_v55 }
 0x1cd   :  { %v528_v5 = vmul.f32 %v526_v2, %v506_v63 }
 0x22a   :  { %v531_v61 = vpop.permute.xlu0 %530 }
 0x22b   :  { %v533_v0 = vmul.f32 %v531_v61, %v506_v63 }
 0x22d   :  { %535 = vrot.lane.b32.xlu1 %v533_v0, %s2236_s5 }
 0x29f   :  { %v536_v6 = vpop.permute.xlu1 %535 }
 0x2a0   :  { %v2537_v9 = vadd.f32 %v536_v6, %v528_v5 }
 0x2a2   :  { %2001 = vtanh.f32 %v2537_v9 }
 0x2a3   :  { %2003 = vpow2.f32 %v1851_v12 }
 0x2a8   :  { %v2002_v11 = vpop.eup %2001 }
 0x2a9   :  { %541 = vrot.lane.b32.xlu2 %v2002_v11, %s2236_s5  ;;  %v2004_v13 = vpop.eup %2003 }
 0x2aa   :  { %v492_v23 = vadd.f32 1.0, %v2004_v13 }
 0x2ac   :  { %2005 = vrcp.f32 %v492_v23  ;;  %v519_v34 = vand.u32 2147483648, %v492_v23  ;;  %vm513_vm15 = vweird.f32 %v492_v23  ;;  %v517_v35 = vand.u32 2147483647, %v492_v23 }
 0x2ae   :  { %v520_v38 = vor.u32 1.1754944e-38, %v519_v34  ;;  %vm518_vm2 = vcmp.eq.f32.partialorder %v517_v35, 8.507059e+37 }
 0x2b2   :  { %v2006_v24 = vpop.eup %2005 }
 0x2b3   :  { %v509_v26 = vmul.f32 %v2006_v24, %v492_v23  ;;  %vm514_vm14 = vweird.f32 %v2006_v24 }
 0x2b4   :  { %vm515_vm1 = vmor %vm513_vm15, %vm514_vm14 }
 0x2b5   :  { %v510_v27 = vsub.f32 1.0, %v509_v26 }
 0x2b7   :  { %v511_v28 = vmul.f32 %v2006_v24, %v510_v27 }
 0x2b9   :  { %v512_v33 = vadd.f32 %v2006_v24, %v511_v28 }
 0x2bb   :  { %v516_v37 = vsel %vm515_vm1, %v2006_v24, %v512_v33 }
 0x2bc   :  { %v521_v39 = vsel %vm518_vm2, %v520_v38, %v516_v37 }
 0x303   :  { %v542_v40 = vpop.permute.xlu2 %541 }
 0x304   :  { %v544_v29 = vmul.f32 %v542_v40, %v521_v39 }
 0x306   :  { %v551_v42 = vpack.c.bf16 %v544_v29, %v544_v29 }
 0x308   :  { %1852 = vmatmul.msk.bf16.vlgmr.msra.gmra.mxu2 %vm455_vm9, %v551_v42  ;;  %1853 = vmatmul.msk.bf16.vlgmr.msrb.gmra.mxu3 %vm455_vm9, %v551_v42 }
 0x309   :  { %940 = vmatpush.bf16.msrb.mxu3 %v2423_v46  ;;  %927 = vmatpush.bf16.msra.mxu2 %v2433_v56 }
 0x30d   :  { %941 = vmatpush.bf16.msrb.mxu3 %v2428_v51  ;;  %928 = vmatpush.bf16.msra.mxu2 %v2464_v14 }
 0x311   :  { %942 = vmatpush.bf16.msrb.mxu3 %v2438_v58  ;;  %929 = vmatpush.bf16.msra.mxu2 %v2467_v17 }
 0x315   :  { %943 = vmatpush.bf16.msrb.mxu3 %v2444_v62  ;;  %930 = vmatpush.bf16.msra.mxu2 %v2471_v21 }
 0x38b   :  { %v564_v43 = vpop.f32.mrf.mxu2  ;;  %v577_v30 = vpop.f32.mrf.mxu3 }
 0x38c   :  { %v565_v44 = vadd.f32 %v564_v43, %v2520_v15  ;;  %v578_v45 = vadd.f32 %v577_v30, %v2509_v7 }
 0x38e   :  { %2007 = vtanh.f32 %v578_v45  ;;  %v1854_v52 = vmul.f32 -1.442695, %v565_v44  ;;  %v1855_v28 = vmul.f32 -1.442695, %v578_v45 }
 0x390   :  { %2009 = vpow2.f32 %v1854_v52 }
 0x393   :  { %v566_v47 = vpop.f32.mrf.mxu2  ;;  %v579_v49 = vpop.f32.mrf.mxu3 }
 0x394   :  { %v2008_v50 = vpop.eup %2007  ;;  %v171_v49 = vadd.f32 %v2528_v20, %v2425_v48 }
 0x395   :  { %622 = vrot.lane.b32.xlu2 %v2008_v50, %s2236_s5 }
 0x396   :  { %v2010_v54 = vpop.eup %2009  ;;  %v641_v50 = vadd.f32 %v2517_v10, %v171_v49 }
 0x397   :  { %v587_v55 = vadd.f32 1.0, %v2010_v54 }
 0x399   :  { %2011 = vrcp.f32 %v587_v55  ;;  %v600_v15 = vand.u32 2147483648, %v587_v55  ;;  %vm594_vm4 = vweird.f32 %v587_v55  ;;  %v598_v7 = vand.u32 2147483647, %v587_v55 }
 0x39b   :  { %v601_v6 = vor.u32 1.1754944e-38, %v600_v15  ;;  %vm599_vm6 = vcmp.eq.f32.partialorder %v598_v7, 8.507059e+37 }
 0x39f   :  { %v2012_v57 = vpop.eup %2011 }
 0x3a0   :  { %v590_v61 = vmul.f32 %v2012_v57, %v587_v55  ;;  %vm595_vm3 = vweird.f32 %v2012_v57 }
 0x3a1   :  { %vm596_vm5 = vmor %vm594_vm4, %vm595_vm3 }
 0x3a2   :  { %v591_v63 = vsub.f32 1.0, %v590_v61 }
 0x3a4   :  { %v592_v0 = vmul.f32 %v2012_v57, %v591_v63 }
 0x3a6   :  { %v593_v2 = vadd.f32 %v2012_v57, %v592_v0 }
 0x3a8   :  { %v597_v5 = vsel %vm596_vm5, %v2012_v57, %v593_v2 }
 0x3a9   :  { %v602_v12 = vsel %vm599_vm6, %v601_v6, %v597_v5 }
 0x3aa   :  { %v620_v23 = vmul.f32 %v602_v12, %v2537_v9 }
 0x3ef   :  { %v623_v11 = vpop.permute.xlu2 %622 }
 0x3f0   :  { %v625_v13 = vmul.f32 %v623_v11, %v602_v12 }
 0x3f2   :  { %627 = vrot.lane.b32.xlu0 %v625_v13, %s2236_s5 }
 0x464   :  { %v628_v24 = vpop.permute.xlu0 %627 }
 0x465   :  { %v2556_v26 = vadd.f32 %v628_v24, %v620_v23 }
 0x467   :  { %2013 = vtanh.f32 %v2556_v26 }
 0x468   :  { %2015 = vpow2.f32 %v1855_v28 }
 0x46d   :  { %v2014_v27 = vpop.eup %2013 }
 0x46e   :  { %633 = vrot.lane.b32.xlu1 %v2014_v27, %s2236_s5  ;;  %v2016_v33 = vpop.eup %2015 }
 0x46f   :  { %v588_v34 = vadd.f32 1.0, %v2016_v33 }
 0x471   :  { %2017 = vrcp.f32 %v588_v34  ;;  %v615_v9 = vand.u32 2147483648, %v588_v34  ;;  %vm609_vm8 = vweird.f32 %v588_v34  ;;  %v613_v29 = vand.u32 2147483647, %v588_v34 }
 0x473   :  { %v616_v43 = vor.u32 1.1754944e-38, %v615_v9  ;;  %vm614_vm11 = vcmp.eq.f32.partialorder %v613_v29, 8.507059e+37 }
 0x477   :  { %v2018_v35 = vpop.eup %2017 }
 0x478   :  { %v605_v37 = vmul.f32 %v2018_v35, %v588_v34  ;;  %vm610_vm7 = vweird.f32 %v2018_v35 }
 0x479   :  { %vm611_vm10 = vmor %vm609_vm8, %vm610_vm7 }
 0x47a   :  { %v606_v38 = vsub.f32 1.0, %v605_v37 }
 0x47c   :  { %v607_v39 = vmul.f32 %v2018_v35, %v606_v38 }
 0x47e   :  { %v608_v40 = vadd.f32 %v2018_v35, %v607_v39 }
 0x480   :  { %v612_v42 = vsel %vm611_vm10, %v2018_v35, %v608_v40 }
 0x481   :  { %v617_v30 = vsel %vm614_vm11, %v616_v43, %v612_v42 }
 0x4e0   :  { %v634_v44 = vpop.permute.xlu1 %633 }
 0x4e1   :  { %v636_v45 = vmul.f32 %v634_v44, %v617_v30  ;;  %v215_v30 = vadd.f32 %v2522_v16, %v2420_v36  ;;  %v174_v44 = vadd.f32 %v2415_v32, %v2425_v48 }
 0x4e3   :  { %v643_v47 = vpack.c.bf16 %v636_v45, %v636_v45  ;;  %v733_v45 = vadd.f32 %v2515_v8, %v174_v44 }
 0x4e5   :  { %1856 = vmatmul.msk.bf16.vlgmr.msra.gmra.mxu0 %vm455_vm9, %v643_v47  ;;  %1857 = vmatmul.msk.bf16.vlgmr.msrb.gmra.mxu1 %vm455_vm9, %v643_v47  ;;  %v734_v47 = vadd.f32 %v2493_v53, %v215_v30 }
 0x4e6   :  { %1032 = vmatpush.bf16.msrb.mxu1 %v2423_v46  ;;  %1019 = vmatpush.bf16.msra.mxu0 %v2433_v56 }
 0x4ea   :  { %1033 = vmatpush.bf16.msrb.mxu1 %v2428_v51  ;;  %1020 = vmatpush.bf16.msra.mxu0 %v2464_v14 }
 0x4ee   :  { %1034 = vmatpush.bf16.msrb.mxu1 %v2438_v58  ;;  %1021 = vmatpush.bf16.msra.mxu0 %v2467_v17 }
 0x4f2   :  { %1035 = vmatpush.bf16.msrb.mxu1 %v2444_v62  ;;  %1022 = vmatpush.bf16.msra.mxu0 %v2471_v21 }
 0x562   :  { %v656_v46 = vpop.f32.mrf.mxu0  ;;  %v669_v52 = vpop.f32.mrf.mxu1 }
 0x563   :  { %v657_v56 = vadd.f32 %v656_v46, %v641_v50  ;;  %v670_v51 = vadd.f32 %v669_v52, %v2502_v3 }
 0x565   :  { %2019 = vtanh.f32 %v670_v51  ;;  %v1858_v17 = vmul.f32 -1.442695, %v657_v56  ;;  %v1859_v23 = vmul.f32 -1.442695, %v670_v51 }
 0x567   :  { %2021 = vpow2.f32 %v1858_v17 }
 0x56a   :  { %v658_v14 = vpop.f32.mrf.mxu0  ;;  %v671_v54 = vpop.f32.mrf.mxu1 }
 0x56b   :  { %v2020_v58 = vpop.eup %2019 }
 0x56c   :  { %714 = vrot.lane.b32.xlu2 %v2020_v58, %s2236_s5 }
 0x56d   :  { %v2022_v62 = vpop.eup %2021 }
 0x56e   :  { %v679_v21 = vadd.f32 1.0, %v2022_v62 }
 0x570   :  { %2023 = vrcp.f32 %v679_v21  ;;  %v692_v63 = vand.u32 2147483648, %v679_v21  ;;  %vm686_vm13 = vweird.f32 %v679_v21  ;;  %v690_v3 = vand.u32 2147483647, %v679_v21 }
 0x572   :  { %v693_v2 = vor.u32 1.1754944e-38, %v692_v63  ;;  %vm691_vm15 = vcmp.eq.f32.partialorder %v690_v3, 8.507059e+37 }
 0x576   :  { %v2024_v55 = vpop.eup %2023 }
 0x577   :  { %v682_v20 = vmul.f32 %v2024_v55, %v679_v21  ;;  %vm687_vm12 = vweird.f32 %v2024_v55 }
 0x578   :  { %vm688_vm14 = vmor %vm686_vm13, %vm687_vm12 }
 0x579   :  { %v683_v57 = vsub.f32 1.0, %v682_v20 }
 0x57b   :  { %v684_v10 = vmul.f32 %v2024_v55, %v683_v57 }
 0x57d   :  { %v685_v61 = vadd.f32 %v2024_v55, %v684_v10 }
 0x57f   :  { %v689_v0 = vsel %vm688_vm14, %v2024_v55, %v685_v61 }
 0x580   :  { %v694_v7 = vsel %vm691_vm15, %v693_v2, %v689_v0 }
 0x581   :  { %v712_v6 = vmul.f32 %v694_v7, %v2556_v26 }
 0x5c6   :  { %v715_v15 = vpop.permute.xlu2 %714 }
 0x5c7   :  { %v717_v5 = vmul.f32 %v715_v15, %v694_v7 }
 0x5c9   :  { %719 = vrot.lane.b32.xlu0 %v717_v5, %s2236_s5 }
 0x63b   :  { %v720_v11 = vpop.permute.xlu0 %719 }
 0x63c   :  { %v2577_v12 = vadd.f32 %v720_v11, %v712_v6 }
 0x63e   :  { %2025 = vtanh.f32 %v2577_v12 }
 0x63f   :  { %2027 = vpow2.f32 %v1859_v23 }
 0x644   :  { %v2026_v13 = vpop.eup %2025 }
 0x645   :  { %725 = vrot.lane.b32.xlu1 %v2026_v13, %s2236_s5  ;;  %v2028_v24 = vpop.eup %2027 }
 0x646   :  { %v680_v27 = vadd.f32 1.0, %v2028_v24 }
 0x648   :  { %2029 = vrcp.f32 %v680_v27  ;;  %v707_v26 = vand.u32 2147483648, %v680_v27  ;;  %vm701_vm2 = vweird.f32 %v680_v27  ;;  %v705_v38 = vand.u32 2147483647, %v680_v27 }
 0x64a   :  { %v708_v40 = vor.u32 1.1754944e-38, %v707_v26  ;;  %vm706_vm4 = vcmp.eq.f32.partialorder %v705_v38, 8.507059e+37  ;;  %v218_v38 = vadd.f32 %v2524_v18, %v2420_v36 }
 0x64e   :  { %v2030_v28 = vpop.eup %2029 }
 0x64f   :  { %v697_v33 = vmul.f32 %v2030_v28, %v680_v27  ;;  %vm702_vm1 = vweird.f32 %v2030_v28 }
 0x650   :  { %vm703_vm3 = vmor %vm701_vm2, %vm702_vm1 }
 0x651   :  { %v698_v34 = vsub.f32 1.0, %v697_v33 }
 0x653   :  { %v699_v35 = vmul.f32 %v2030_v28, %v698_v34 }
 0x655   :  { %v700_v37 = vadd.f32 %v2030_v28, %v699_v35 }
 0x657   :  { %v704_v39 = vsel %vm703_vm3, %v2030_v28, %v700_v37 }
 0x658   :  { %v709_v9 = vsel %vm706_vm4, %v708_v40, %v704_v39  ;;  %v826_v39 = vadd.f32 %v2490_v41, %v218_v38 }
 0x6b7   :  { %v726_v29 = vpop.permute.xlu1 %725 }
 0x6b8   :  { %v728_v42 = vmul.f32 %v726_v29, %v709_v9 }
 0x6ba   :  { %v735_v43 = vpack.c.bf16 %v728_v42, %v728_v42 }
 0x6bc   :  { %1860 = vmatmul.msk.bf16.vlgmr.msrb.gmra.mxu2 %vm455_vm9, %v735_v43  ;;  %1861 = vmatmul.msk.bf16.vlgmr.msra.gmra.mxu3 %vm455_vm9, %v735_v43 }
 0x73f   :  { %v748_v49 = vpop.f32.mrf.mxu2  ;;  %v761_v50 = vpop.f32.mrf.mxu3 }
 0x740   :  { %v749_v46 = vadd.f32 %v748_v49, %v733_v45  ;;  %v762_v52 = vadd.f32 %v761_v50, %v734_v47 }
 0x742   :  { %2031 = vtanh.f32 %v762_v52  ;;  %v1862_v54 = vmul.f32 -1.442695, %v749_v46  ;;  %v1863_v15 = vmul.f32 -1.442695, %v762_v52 }
 0x744   :  { %2033 = vpow2.f32 %v1862_v54 }
 0x747   :  { %v750_v56 = vpop.f32.mrf.mxu2  ;;  %v763_v51 = vpop.f32.mrf.mxu3 }
 0x748   :  { %v2032_v14 = vpop.eup %2031 }
 0x749   :  { %806 = vrot.lane.b32.xlu2 %v2032_v14, %s2236_s5 }
 0x74a   :  { %v2034_v16 = vpop.eup %2033 }
 0x74b   :  { %v771_v58 = vadd.f32 1.0, %v2034_v16 }
 0x74d   :  { %2035 = vrcp.f32 %v771_v58  ;;  %v784_v62 = vand.u32 2147483648, %v771_v58  ;;  %vm778_vm6 = vweird.f32 %v771_v58  ;;  %v782_v21 = vand.u32 2147483647, %v771_v58 }
 0x74f   :  { %v785_v20 = vor.u32 1.1754944e-38, %v784_v62  ;;  %vm783_vm8 = vcmp.eq.f32.partialorder %v782_v21, 8.507059e+37 }
 0x753   :  { %v2036_v32 = vpop.eup %2035 }
 0x754   :  { %v774_v48 = vmul.f32 %v2036_v32, %v771_v58  ;;  %vm779_vm5 = vweird.f32 %v2036_v32 }
 0x755   :  { %vm780_vm7 = vmor %vm778_vm6, %vm779_vm5 }
 0x756   :  { %v775_v8 = vsub.f32 1.0, %v774_v48 }
 0x758   :  { %v776_v17 = vmul.f32 %v2036_v32, %v775_v8 }
 0x75a   :  { %v777_v53 = vadd.f32 %v2036_v32, %v776_v17 }
 0x75c   :  { %v781_v55 = vsel %vm780_vm7, %v2036_v32, %v777_v53 }
 0x75d   :  { %v786_v10 = vsel %vm783_vm8, %v785_v20, %v781_v55 }
 0x75e   :  { %v804_v63 = vmul.f32 %v786_v10, %v2577_v12 }
 0x7a3   :  { %v807_v57 = vpop.permute.xlu2 %806 }
 0x7a4   :  { %v809_v61 = vmul.f32 %v807_v57, %v786_v10 }
 0x7a6   :  { %811 = vrot.lane.b32.xlu0 %v809_v61, %s2236_s5 }
 0x818   :  { %v812_v3 = vpop.permute.xlu0 %811 }
 0x819   :  { %v814_v0 = vadd.f32 %v812_v3, %v804_v63 }
 0x81b   :  { %2037 = vtanh.f32 %v814_v0 }
 0x81c   :  { %2039 = vpow2.f32 %v1863_v15 }
 0x821   :  { %v2038_v2 = vpop.eup %2037 }
 0x822   :  { %817 = vrot.lane.b32.xlu1 %v2038_v2, %s2236_s5  ;;  %v2040_v7 = vpop.eup %2039 }
 0x823   :  { %v772_v5 = vadd.f32 1.0, %v2040_v7 }
 0x825   :  { %2041 = vrcp.f32 %v772_v5  ;;  %v799_v27 = vand.u32 2147483648, %v772_v5  ;;  %vm793_vm11 = vweird.f32 %v772_v5  ;;  %v797_v12 = vand.u32 2147483647, %v772_v5 }
 0x827   :  { %v800_v33 = vor.u32 1.1754944e-38, %v799_v27  ;;  %vm798_vm13 = vcmp.eq.f32.partialorder %v797_v12, 8.507059e+37 }
 0x82b   :  { %v2042_v6 = vpop.eup %2041 }
 0x82c   :  { %v789_v11 = vmul.f32 %v2042_v6, %v772_v5  ;;  %vm794_vm10 = vweird.f32 %v2042_v6 }
 0x82d   :  { %vm795_vm12 = vmor %vm793_vm11, %vm794_vm10 }
 0x82e   :  { %v790_v13 = vsub.f32 1.0, %v789_v11  ;;  %v221_v11 = vadd.f32 %v2526_v19, %v2420_v36 }
 0x830   :  { %v791_v23 = vmul.f32 %v2042_v6, %v790_v13  ;;  %v918_v13 = vadd.f32 %v2486_v31, %v221_v11 }
 0x832   :  { %v792_v24 = vadd.f32 %v2042_v6, %v791_v23 }
 0x834   :  { %v796_v28 = vsel %vm795_vm12, %v2042_v6, %v792_v24 }
 0x835   :  { %v801_v34 = vsel %vm798_vm13, %v800_v33, %v796_v28 }
 0x894   :  { %v818_v35 = vpop.permute.xlu1 %817 }
 0x895   :  { %v820_v37 = vmul.f32 %v818_v35, %v801_v34 }
 0x897   :  { %v827_v26 = vpack.c.bf16 %v820_v37, %v820_v37 }
 0x899   :  { %1864 = vmatmul.msk.bf16.vlgmr.msrb.gmra.mxu0 %vm455_vm9, %v827_v26  ;;  %1865 = vmatmul.msk.bf16.vlgmr.msra.gmra.mxu1 %vm455_vm9, %v827_v26 }
 0x916   :  { %v840_v40 = vpop.f32.mrf.mxu0  ;;  %v853_v9 = vpop.f32.mrf.mxu1 }
 0x917   :  { %v841_v29 = vadd.f32 %v840_v40, %v2457_v4  ;;  %v854_v42 = vadd.f32 %v853_v9, %v826_v39 }
 0x919   :  { %2043 = vtanh.f32 %v854_v42  ;;  %v1866_v45 = vmul.f32 -1.442695, %v841_v29  ;;  %v1867_v53 = vmul.f32 -1.442695, %v854_v42 }
 0x91b   :  { %2045 = vpow2.f32 %v1866_v45 }
 0x91e   :  { %v842_v43 = vpop.f32.mrf.mxu0  ;;  %v855_v30 = vpop.f32.mrf.mxu1 }
 0x91f   :  { %v2044_v44 = vpop.eup %2043 }
 0x920   :  { %898 = vrot.lane.b32.xlu2 %v2044_v44, %s2236_s5 }
 0x921   :  { %v2046_v47 = vpop.eup %2045 }
 0x922   :  { %v863_v49 = vadd.f32 1.0, %v2046_v47 }
 0x924   :  { %2047 = vrcp.f32 %v863_v49  ;;  %v876_v56 = vand.u32 2147483648, %v863_v49  ;;  %vm870_vm15 = vweird.f32 %v863_v49  ;;  %v874_v4 = vand.u32 2147483647, %v863_v49 }
 0x926   :  { %v877_v14 = vor.u32 1.1754944e-38, %v876_v56  ;;  %vm875_vm2 = vcmp.eq.f32.partialorder %v874_v4, 8.507059e+37 }
 0x92a   :  { %v2048_v50 = vpop.eup %2047 }
 0x92b   :  { %v866_v18 = vmul.f32 %v2048_v50, %v863_v49  ;;  %vm871_vm14 = vweird.f32 %v2048_v50 }
 0x92c   :  { %vm872_vm1 = vmor %vm870_vm15, %vm871_vm14 }
 0x92d   :  { %v867_v46 = vsub.f32 1.0, %v866_v18 }
 0x92f   :  { %v868_v41 = vmul.f32 %v2048_v50, %v867_v46 }
 0x931   :  { %v869_v52 = vadd.f32 %v2048_v50, %v868_v41 }
 0x933   :  { %v873_v51 = vsel %vm872_vm1, %v2048_v50, %v869_v52 }
 0x934   :  { %v878_v16 = vsel %vm875_vm2, %v877_v14, %v873_v51 }
 0x935   :  { %v896_v32 = vmul.f32 %v878_v16, %v814_v0 }
 0x97a   :  { %v899_v54 = vpop.permute.xlu2 %898 }
 0x97b   :  { %v901_v58 = vmul.f32 %v899_v54, %v878_v16 }
 0x97d   :  { %903 = vrot.lane.b32.xlu0 %v901_v58, %s2236_s5 }
 0x9ef   :  { %v904_v48 = vpop.permute.xlu0 %903 }
 0x9f0   :  { %v906_v8 = vadd.f32 %v904_v48, %v896_v32 }
 0x9f2   :  { %2049 = vtanh.f32 %v906_v8 }
 0x9f3   :  { %2051 = vpow2.f32 %v1867_v53 }
 0x9f8   :  { %v2050_v17 = vpop.eup %2049 }
 0x9f9   :  { %909 = vrot.lane.b32.xlu1 %v2050_v17, %s2236_s5  ;;  %v2052_v62 = vpop.eup %2051 }
 0x9fa   :  { %v864_v21 = vadd.f32 1.0, %v2052_v62  ;;  %v224_v62 = vadd.f32 %v2530_v22, %v2420_v36 }
 0x9fc   :  { %2053 = vrcp.f32 %v864_v21  ;;  %v891_v63 = vand.u32 2147483648, %v864_v21  ;;  %vm885_vm4 = vweird.f32 %v864_v21  ;;  %v889_v3 = vand.u32 2147483647, %v864_v21 }
 0x9fe   :  { %v892_v2 = vor.u32 1.1754944e-38, %v891_v63  ;;  %vm890_vm6 = vcmp.eq.f32.partialorder %v889_v3, 8.507059e+37 }
 0xa02   :  { %v2054_v55 = vpop.eup %2053 }
 0xa03   :  { %v881_v20 = vmul.f32 %v2054_v55, %v864_v21  ;;  %vm886_vm3 = vweird.f32 %v2054_v55  ;;  %v1010_v21 = vadd.f32 %v2478_v25, %v224_v62  ;;  %v1112_v62 = vld [vmem:[#allocation6 + $0x18] sm:$0xff] }
 0xa04   :  { %vm887_vm5 = vmor %vm885_vm4, %vm886_vm3 }
 0xa05   :  { %v882_v57 = vsub.f32 1.0, %v881_v20 }
 0xa07   :  { %v883_v10 = vmul.f32 %v2054_v55, %v882_v57 }
 0xa09   :  { %v884_v61 = vadd.f32 %v2054_v55, %v883_v10 }
 0xa0b   :  { %v888_v0 = vsel %vm887_vm5, %v2054_v55, %v884_v61 }
 0xa0c   :  { %v893_v15 = vsel %vm890_vm6, %v892_v2, %v888_v0 }
 0xa6b   :  { %v910_v7 = vpop.permute.xlu1 %909 }
 0xa6c   :  { %v912_v5 = vmul.f32 %v910_v7, %v893_v15 }
 0xa6e   :  { %v919_v6 = vpack.c.bf16 %v912_v5, %v912_v5 }
 0xa70   :  { %1868 = vmatmul.msk.bf16.vlgmr.msra.gmra.mxu2 %vm455_vm9, %v919_v6  ;;  %1869 = vmatmul.msk.bf16.vlgmr.msrb.gmra.mxu3 %vm455_vm9, %v919_v6 }
 0xaf3   :  { %v932_v23 = vpop.f32.mrf.mxu2  ;;  %v945_v24 = vpop.f32.mrf.mxu3 }
 0xaf4   :  { %v933_v27 = vadd.f32 %v932_v23, %v2450_v1  ;;  %v946_v12 = vadd.f32 %v945_v24, %v918_v13 }
 0xaf6   :  { %2055 = vtanh.f32 %v946_v12  ;;  %v1870_v35 = vmul.f32 -1.442695, %v933_v27  ;;  %v1871_v18 = vmul.f32 -1.442695, %v946_v12  ;;  %v1115_v12 = vld [vmem:[#allocation6 + $0x30] sm:$0xff] }
 0xaf7   :  { %1138 = vmatpush.msrb.mxu2 %v1115_v12 }
 0xaf8   :  { %2057 = vpow2.f32 %v1870_v35  ;;  %v1948_v35 = vld [vmem:[#allocation8 + $0x34] sm:$0xf] }
 0xafb   :  { %v934_v28 = vpop.f32.mrf.mxu2  ;;  %v947_v33 = vpop.f32.mrf.mxu3 }
 0xafc   :  { %v2056_v34 = vpop.eup %2055  ;;  %v1113_v28 = vld [vmem:[#allocation6 + $0x20] sm:$0xff]  ;;  %v1904_v33 = vld [vmem:[#allocation8 + $0x30] sm:$0xf] }
 0xafd   :  { %990 = vrot.lane.b32.xlu2 %v2056_v34, %s2236_s5  ;;  %v1949_v34 = vld [vmem:[#allocation8 + $0x34] sm:$0xf0]  ;;  %1139 = vmatpush.msrb.mxu2 %v1113_v28 }
 0xafe   :  { %v2058_v37 = vpop.eup %2057 }
 0xaff   :  { %v955_v26 = vadd.f32 1.0, %v2058_v37  ;;  %v1111_v37 = vld [vmem:[#allocation6 + $0x10] sm:$0xff] }
 0xb00   :  { %1140 = vmatpush.msrb.mxu2 %v1111_v37 }
 0xb01   :  { %2059 = vrcp.f32 %v955_v26  ;;  %v968_v9 = vand.u32 2147483648, %v955_v26  ;;  %vm962_vm8 = vweird.f32 %v955_v26  ;;  %v966_v1 = vand.u32 2147483647, %v955_v26 }
 0xb03   :  { %v969_v42 = vor.u32 1.1754944e-38, %v968_v9  ;;  %vm967_vm11 = vcmp.eq.f32.partialorder %v966_v1, 8.507059e+37  ;;  %v1898_v9 = vld [vmem:[#allocation8 + $0x28] sm:$0xf0]  ;;  %v1109_v1 = vld [vmem:[#allocation6] sm:$0xff] }
 0xb04   :  { %1141 = vmatpush.msrb.mxu2 %v1109_v1 }
 0xb07   :  { %v2060_v38 = vpop.eup %2059 }
 0xb08   :  { %v958_v19 = vmul.f32 %v2060_v38, %v955_v26  ;;  %vm963_vm7 = vweird.f32 %v2060_v38  ;;  %v2625_v26 = vor.u32 %v1949_v34, %v1904_v33 }
 0xb09   :  { %vm964_vm10 = vmor %vm962_vm8, %vm963_vm7 }
 0xb0a   :  { %v959_v39 = vsub.f32 1.0, %v958_v19  ;;  %v1896_v19 = vld [vmem:[#allocation8 + $0x20] sm:$0xf]  ;;  %1219 = vmatpush.bf16.msrb.mxu0 %v2625_v26  ;;  %1290 = vmatpush.bf16.msra.mxu2 %v2625_v26 }
 0xb0c   :  { %v960_v31 = vmul.f32 %v2060_v38, %v959_v39 }
 0xb0e   :  { %v961_v40 = vadd.f32 %v2060_v38, %v960_v31  ;;  %v1947_v31 = vld [vmem:[#allocation8 + $0x24] sm:$0xf0] }
 0xb10   :  { %v965_v29 = vsel %vm964_vm10, %v2060_v38, %v961_v40  ;;  %v1906_v38 = vld [vmem:[#allocation8 + $0x38] sm:$0xf0]  ;;  %v1946_v40 = vld [vmem:[#allocation8 + $0x24] sm:$0xf] }
 0xb11   :  { %v970_v30 = vsel %vm967_vm11, %v969_v42, %v965_v29  ;;  %v2627_v39 = vor.u32 %v1948_v35, %v1906_v38  ;;  %v2630_v29 = vor.u32 %v1947_v31, %v1896_v19  ;;  %v1107_v42 = vld [vmem:[%s2893_s1] sm:$0x3f] }
 0xb12   :  { %v988_v45 = vmul.f32 %v970_v30, %v906_v8 }
 0xb13   :  { %1232 = vmatpush.bf16.msra.mxu1 %v2627_v39  ;;  %1220 = vmatpush.bf16.msrb.mxu0 %v2630_v29 }
 0xb14   :  { %1291 = vmatpush.bf16.msra.mxu2 %v2630_v29 }
 0xb57   :  { %v991_v43 = vpop.permute.xlu2 %990 }
 0xb58   :  { %v993_v44 = vmul.f32 %v991_v43, %v970_v30  ;;  %v2636_v43 = vor.u32 %v1946_v40, %v1898_v9  ;;  %v1888_v30 = vld [vmem:[#allocation8 + $0x10] sm:$0xf] }
 0xb5a   :  { %995 = vrot.lane.b32.xlu0 %v993_v44, %s2236_s5  ;;  %v1945_v44 = vld [vmem:[#allocation8 + $0x14] sm:$0xf0]  ;;  %1233 = vmatpush.bf16.msra.mxu1 %v2636_v43 }
 0xbcc   :  { %v996_v47 = vpop.permute.xlu0 %995 }
 0xbcd   :  { %v2610_v49 = vadd.f32 %v996_v47, %v988_v45  ;;  %v1944_v45 = vld [vmem:[#allocation8 + $0x14] sm:$0xf]  ;;  %v1890_v47 = vld [vmem:[#allocation8 + $0x18] sm:$0xf0] }
 0xbcf   :  { %2061 = vtanh.f32 %v2610_v49 }
 0xbd0   :  { %2063 = vpow2.f32 %v1871_v18  ;;  %v2643_v18 = vor.u32 %v1944_v45, %v1890_v47 }
 0xbd2   :  { %1234 = vmatpush.bf16.msra.mxu1 %v2643_v18 }
 0xbd5   :  { %v2062_v50 = vpop.eup %2061 }
 0xbd6   :  { %1001 = vrot.lane.b32.xlu1 %v2062_v50, %s2236_s5  ;;  %v2064_v46 = vpop.eup %2063  ;;  %v2639_v50 = vor.u32 %v1945_v44, %v1888_v30 }
 0xbd7   :  { %v956_v41 = vadd.f32 1.0, %v2064_v46 }
 0xbd8   :  { %1221 = vmatpush.bf16.msrb.mxu0 %v2639_v50  ;;  %1292 = vmatpush.bf16.msra.mxu2 %v2639_v50 }
 0xbd9   :  { %2065 = vrcp.f32 %v956_v41  ;;  %v983_v54 = vand.u32 2147483648, %v956_v41  ;;  %vm977_vm13 = vweird.f32 %v956_v41  ;;  %v981_v16 = vand.u32 2147483647, %v956_v41 }
 0xbdb   :  { %v984_v32 = vor.u32 1.1754944e-38, %v983_v54  ;;  %vm982_vm15 = vcmp.eq.f32.partialorder %v981_v16, 8.507059e+37  ;;  %v1880_v16 = vld [vmem:[#allocation8] sm:$0xf] }
 0xbdf   :  { %v2066_v52 = vpop.eup %2065 }
 0xbe0   :  { %v973_v56 = vmul.f32 %v2066_v52, %v956_v41  ;;  %vm978_vm12 = vweird.f32 %v2066_v52 }
 0xbe1   :  { %vm979_vm14 = vmor %vm977_vm13, %vm978_vm12 }
 0xbe2   :  { %v974_v4 = vsub.f32 1.0, %v973_v56 }
 0xbe4   :  { %v975_v51 = vmul.f32 %v2066_v52, %v974_v4 }
 0xbe6   :  { %v976_v14 = vadd.f32 %v2066_v52, %v975_v51 }
 0xbe8   :  { %v980_v58 = vsel %vm979_vm14, %v2066_v52, %v976_v14 }
 0xbe9   :  { %v985_v48 = vsel %vm982_vm15, %v984_v32, %v980_v58  ;;  %v1943_v58 = vld [vmem:[#allocation8 + $0x4] sm:$0xf0]  ;;  %v1942_v32 = vld [vmem:[#allocation8 + $0x4] sm:$0xf] }
 0xc48   :  { %v1002_v8 = vpop.permute.xlu1 %1001 }
 0xc49   :  { %v1004_v17 = vmul.f32 %v1002_v8, %v985_v48  ;;  %v2653_v48 = vor.u32 %v1943_v58, %v1880_v16  ;;  %v1882_v8 = vld [vmem:[#allocation8 + $0x8] sm:$0xf0] }
 0xc4b   :  { %v1011_v53 = vpack.c.bf16 %v1004_v17, %v1004_v17  ;;  %v2655_v17 = vor.u32 %v1942_v32, %v1882_v8  ;;  %1222 = vmatpush.bf16.msrb.mxu0 %v2653_v48  ;;  %1293 = vmatpush.bf16.msra.mxu2 %v2653_v48 }
 0xc4d   :  { %1872 = vmatmul.msk.bf16.vlgmr.msra.gmra.mxu0 %vm455_vm9, %v1011_v53  ;;  %1873 = vmatmul.msk.bf16.vlgmr.msrb.gmra.mxu1 %vm455_vm9, %v1011_v53  ;;  %v1114_v53 = vld [vmem:[#allocation6 + $0x28] sm:$0xff] }
 0xc4e   :  { %1235 = vmatpush.bf16.msra.mxu1 %v2655_v17 }
 0xc4f   :  { %1357 = vmatpush.bf16.msra.mxu0 %v2625_v26 }
 0xc52   :  { %1370 = vmatpush.bf16.msrb.mxu1 %v2627_v39 }
 0xc53   :  { %1358 = vmatpush.bf16.msra.mxu0 %v2630_v29 }
 0xc56   :  { %1371 = vmatpush.bf16.msrb.mxu1 %v2636_v43 }
 0xc57   :  { %1359 = vmatpush.bf16.msra.mxu0 %v2639_v50 }
 0xc5a   :  { %1372 = vmatpush.bf16.msrb.mxu1 %v2643_v18 }
 0xc5b   :  { %1360 = vmatpush.bf16.msra.mxu0 %v2653_v48 }
 0xc5e   :  { %1373 = vmatpush.bf16.msrb.mxu1 %v2655_v17 }
 0xcca   :  { %v1024_v55 = vpop.f32.mrf.mxu0  ;;  %v1037_v20 = vpop.f32.mrf.mxu1 }
 0xccb   :  { %v1025_v57 = vadd.f32 %v1024_v55, %v2441_v59  ;;  %v2620_v10 = vadd.f32 %v1037_v20, %v1010_v21  ;;  %v1110_v55 = vld [vmem:[#allocation6 + $0x8] sm:$0xff] }
 0xccd   :  { %2067 = vtanh.f32 %v2620_v10  ;;  %v1874_v0 = vmul.f32 -1.442695, %v1025_v57  ;;  %v1875_v51 = vmul.f32 -1.442695, %v2620_v10 }
 0xccf   :  { %2069 = vpow2.f32 %v1874_v0 }
 0xcd2   :  { %v1026_v61 = vpop.f32.mrf.mxu0  ;;  %v1039_v63 = vpop.f32.mrf.mxu1 }
 0xcd3   :  { %v2068_v3 = vpop.eup %2067 }
 0xcd4   :  { %1082 = vrot.lane.b32.xlu2 %v2068_v3, %s2236_s5 }
 0xcd5   :  { %v2070_v2 = vpop.eup %2069 }
 0xcd6   :  { %v1047_v15 = vadd.f32 1.0, %v2070_v2 }
 0xcd8   :  { %2071 = vrcp.f32 %v1047_v15  ;;  %v1060_v59 = vand.u32 2147483648, %v1047_v15  ;;  %vm1054_vm2 = vweird.f32 %v1047_v15  ;;  %v1058_v6 = vand.u32 2147483647, %v1047_v15 }
 0xcd9   :  { %2073 = vtanh.f32 %v1107_v42 }
 0xcda   :  { %v1061_v13 = vor.u32 1.1754944e-38, %v1060_v59  ;;  %vm1059_vm4 = vcmp.eq.f32.partialorder %v1058_v6, 8.507059e+37  ;;  %v1106_v6 = vld [vmem:[%s2901_s9] sm:$0x3] }
 0xcdb   :  { %v2706_v42 = vperm.slane %v1106_v6, 1 }
 0xcde   :  { %v2072_v36 = vpop.eup %2071 }
 0xcdf   :  { %v1050_v25 = vmul.f32 %v2072_v36, %v1047_v15  ;;  %vm1055_vm1 = vweird.f32 %v2072_v36  ;;  %v2074_v46 = vpop.eup %2073 }
 0xce0   :  { %vm1056_vm3 = vmor %vm1054_vm2, %vm1055_vm1  ;;  %1876 = vmatmul.msk.f32.vlgmr.msrb.gmra.mxu2 %vm119_vm0, %v2074_v46 }
 0xce1   :  { %v1051_v22 = vsub.f32 1.0, %v1050_v25  ;;  %1424 = vmatpush.bf16.msrb.mxu2 %v2625_v26 }
 0xce3   :  { %v1052_v7 = vmul.f32 %v2072_v36, %v1051_v22 }
 0xce5   :  { %v1053_v5 = vadd.f32 %v2072_v36, %v1052_v7  ;;  %1425 = vmatpush.bf16.msrb.mxu2 %v2630_v29 }
 0xce7   :  { %v1057_v11 = vsel %vm1056_vm3, %v2072_v36, %v1053_v5 }
 0xce8   :  { %v1062_v24 = vsel %vm1059_vm4, %v1061_v13, %v1057_v11  ;;  %v2702_v13 = vperm.slane %v1106_v6, 0 }
 0xce9   :  { %v1080_v41 = vmul.f32 %v1062_v24, %v2610_v49  ;;  %v1116_v49 = vld [vmem:[#allocation6 + $0x38] sm:$0xff]  ;;  %1426 = vmatpush.bf16.msrb.mxu2 %v2639_v50 }
 0xcea   :  { %1158 = vmatpush.msra.mxu3 %v1116_v49 }
 0xcec   :  { %1159 = vmatpush.msra.mxu3 %v1114_v53 }
 0xced   :  { %1427 = vmatpush.bf16.msrb.mxu2 %v2653_v48 }
 0xcee   :  { %1160 = vmatpush.msra.mxu3 %v1112_v62 }
 0xcf0   :  { %1161 = vmatpush.msra.mxu3 %v1110_v55 }
 0xcf1   :  { %1877 = vmatmul.msk.f32.vlgmr.msra.gmra.mxu3 %vm119_vm0, %v2074_v46 }
 0xcf2   :  { %1303 = vmatpush.bf16.msrb.mxu3 %v2627_v39 }
 0xcf6   :  { %1304 = vmatpush.bf16.msrb.mxu3 %v2636_v43 }
 0xcfa   :  { %1305 = vmatpush.bf16.msrb.mxu3 %v2643_v18 }
 0xcfe   :  { %1306 = vmatpush.bf16.msrb.mxu3 %v2655_v17 }
 0xd02   :  { %1437 = vmatpush.bf16.msra.mxu3 %v2627_v39 }
 0xd06   :  { %1438 = vmatpush.bf16.msra.mxu3 %v2636_v43 }
 0xd0a   :  { %1439 = vmatpush.bf16.msra.mxu3 %v2643_v18 }
 0xd0e   :  { %1440 = vmatpush.bf16.msra.mxu3 %v2655_v17 }
 0xd2e   :  { %v1083_v23 = vpop.permute.xlu2 %1082 }
 0xd2f   :  { %v1085_v27 = vmul.f32 %v1083_v23, %v1062_v24 }
 0xd31   :  { %1087 = vrot.lane.b32.xlu0 %v1085_v27, %s2236_s5 }
 0xd63   :  { %v1143_v59 = vpop.f32.mrf.mxu2 }
 0xd74   :  { %v1163_v9 = vpop.f32.mrf.mxu3 }
 0xda3   :  { %v1088_v52 = vpop.permute.xlu0 %1087 }
 0xda4   :  { %v1090_v56 = vadd.f32 %v1088_v52, %v1080_v41 }
 0xda6   :  { %2075 = vtanh.f32 %v1090_v56 }
 0xda7   :  { %2077 = vpow2.f32 %v1875_v51 }
 0xdac   :  { %v2076_v4 = vpop.eup %2075 }
 0xdad   :  { %1093 = vrot.lane.b32.xlu1 %v2076_v4, %s2236_s5  ;;  %v2078_v14 = vpop.eup %2077 }
 0xdae   :  { %v1048_v54 = vadd.f32 1.0, %v2078_v14 }
 0xdb0   :  { %2079 = vrcp.f32 %v1048_v54  ;;  %v1075_v63 = vand.u32 2147483648, %v1048_v54  ;;  %vm1069_vm6 = vweird.f32 %v1048_v54  ;;  %v1073_v3 = vand.u32 2147483647, %v1048_v54 }
 0xdb2   :  { %v1076_v2 = vor.u32 1.1754944e-38, %v1075_v63  ;;  %vm1074_vm8 = vcmp.eq.f32.partialorder %v1073_v3, 8.507059e+37 }
 0xdb6   :  { %v2080_v21 = vpop.eup %2079 }
 0xdb7   :  { %v1065_v20 = vmul.f32 %v2080_v21, %v1048_v54  ;;  %vm1070_vm5 = vweird.f32 %v2080_v21 }
 0xdb8   :  { %vm1071_vm7 = vmor %vm1069_vm6, %vm1070_vm5 }
 0xdb9   :  { %v1066_v57 = vsub.f32 1.0, %v1065_v20 }
 0xdbb   :  { %v1067_v10 = vmul.f32 %v2080_v21, %v1066_v57 }
 0xdbd   :  { %v1068_v61 = vadd.f32 %v2080_v21, %v1067_v10 }
 0xdbf   :  { %v1072_v0 = vsel %vm1071_vm7, %v2080_v21, %v1068_v61 }
 0xdc0   :  { %v1077_v15 = vsel %vm1074_vm8, %v1076_v2, %v1072_v0 }
 0xe1f   :  { %v1094_v36 = vpop.permute.xlu1 %1093 }
 0xe20   :  { %v1096_v25 = vmul.f32 %v1094_v36, %v1077_v15 }
 0xe22   :  { %v1097_v22 = vsel %vm119_vm0, %v1096_v25, %v2495_v60  ;;  %v1117_v60 = vld [vmem:[%s2900_s8] sm:$0x3] }
 0xe23   :  { %1273 = vrot.lane.b32.xlu0 %v1097_v22, %s2236_s5  ;;  %v1166_v7 = vpack.c.bf16 %v1097_v22, %v1097_v22  ;;  %v1119_v5 = vperm.slane %v1117_v60, 0  ;;  %v1120_v40 = vperm.slane %v1117_v60, 1 }
 0xe25   :  { %1910 = vmatmul.msk.bf16.vlgmr.msrb.gmra.mxu0 %vm455_vm9, %v1166_v7  ;;  %1911 = vmatmul.msk.bf16.vlgmr.msra.gmra.mxu1 %vm455_vm9, %v1166_v7  ;;  %v2700_v11 = vadd.f32 %v1143_v59, %v1119_v5  ;;  %v2708_v47 = vadd.f32 %v1163_v9, %v1120_v40 }
 0xe26   :  { %1491 = vmatpush.bf16.msrb.mxu0 %v2625_v26  ;;  %1504 = vmatpush.bf16.msra.mxu1 %v2627_v39 }
 0xe27   :  { %v1241_v23 = vperm.slane %v2700_v11, 0  ;;  %v1263_v4 = vperm.slane %v2708_v47, 0  ;;  %v1334_v59 = vperm.slane %v2708_v47, 1  ;;  %v1379_v40 = vperm.slane %v2700_v11, 2 }
 0xe2a   :  { %1492 = vmatpush.bf16.msrb.mxu0 %v2630_v29  ;;  %1505 = vmatpush.bf16.msra.mxu1 %v2636_v43 }
 0xe2e   :  { %1493 = vmatpush.bf16.msrb.mxu0 %v2639_v50  ;;  %1506 = vmatpush.bf16.msra.mxu1 %v2643_v18 }
 0xe32   :  { %1494 = vmatpush.bf16.msrb.mxu0 %v2653_v48  ;;  %1507 = vmatpush.bf16.msra.mxu1 %v2655_v17 }
 0xe95   :  { %v1274_v32 = vpop.permute.xlu0 %1273 }
 0xea2   :  { %v1224_v24 = vpop.f32.mrf.mxu0  ;;  %v1237_v27 = vpop.f32.mrf.mxu1 }
 0xea3   :  { %v1225_v12 = vadd.f32 %v1224_v24, %v2702_v13  ;;  %v1238_v52 = vadd.f32 %v1237_v27, %v2706_v42 }
 0xea5   :  { %v1242_v28 = vadd.f32 %v1241_v23, %v1225_v12 }
 0xea7   :  { %v1912_v33 = vmul.f32 -1.442695, %v1242_v28 }
 0xea9   :  { %2081 = vpow2.f32 %v1912_v33 }
 0xeaa   :  { %v1226_v34 = vpop.f32.mrf.mxu0  ;;  %v1239_v35 = vpop.f32.mrf.mxu1 }
 0xeaf   :  { %v2082_v37 = vpop.eup %2081 }
 0xeb0   :  { %v1246_v38 = vadd.f32 1.0, %v2082_v37 }
 0xeb2   :  { %2083 = vrcp.f32 %v1246_v38  ;;  %v1258_v30 = vand.u32 2147483648, %v1246_v38  ;;  %v1256_v45 = vand.u32 2147483647, %v1246_v38  ;;  %vm1252_vm10 = vweird.f32 %v1246_v38 }
 0xeb4   :  { %v1259_v41 = vor.u32 1.1754944e-38, %v1258_v30  ;;  %vm1257_vm12 = vcmp.eq.f32.partialorder %v1256_v45, 8.507059e+37 }
 0xeb8   :  { %v2084_v19 = vpop.eup %2083 }
 0xeb9   :  { %v1248_v31 = vmul.f32 %v2084_v19, %v1246_v38  ;;  %vm1253_vm0 = vweird.f32 %v2084_v19 }
 0xeba   :  { %vm1254_vm11 = vmor %vm1252_vm10, %vm1253_vm0 }
 0xebb   :  { %v1249_v1 = vsub.f32 1.0, %v1248_v31 }
 0xebd   :  { %v1250_v44 = vmul.f32 %v2084_v19, %v1249_v1 }
 0xebf   :  { %v1251_v46 = vadd.f32 %v2084_v19, %v1250_v44 }
 0xec1   :  { %v1255_v56 = vsel %vm1254_vm11, %v2084_v19, %v1251_v46 }
 0xec2   :  { %v1260_v51 = vsel %vm1257_vm12, %v1259_v41, %v1255_v56 }
 0xec3   :  { %v1262_v14 = vmul.f32 %v1260_v51, %v1238_v52  ;;  %v1266_v58 = vsub.f32 1.0, %v1260_v51  ;;  %v1276_v49 = vmul.f32 %v1274_v32, %v1260_v51 }
 0xec5   :  { %v1264_v54 = vadd.f32 %v1263_v4, %v1262_v14 }
 0xec7   :  { %2085 = vtanh.f32 %v1264_v54 }
 0xecd   :  { %v2086_v16 = vpop.eup %2085 }
 0xece   :  { %1268 = vrot.lane.b32.xlu2 %v2086_v16, %s2236_s5 }
 0xf28   :  { %v1269_v8 = vpop.permute.xlu2 %1268 }
 0xf29   :  { %v1271_v53 = vmul.f32 %v1269_v8, %v1266_v58 }
 0xf2b   :  { %v1277_v62 = vadd.f32 %v1276_v49, %v1271_v53  ;;  %v1401_v53 = vperm.slane %v2708_v47, 2 }
 0xf2d   :  { %2087 = vtanh.f32 %v1277_v62 }
 0xf33   :  { %v2713_v21 = vpop.eup %2087 }
 0xf34   :  { %v1279_v55 = vpack.c.bf16 %v2713_v21, %v2713_v21 }
 0xf36   :  { %1281 = vrot.lane.b32.xlu1 %v1279_v55, %s2236_s5 }
 0xfa8   :  { %v1282_v20 = vpop.permute.xlu1 %1281 }
 0xfa9   :  { %1913 = vmatmul.msk.bf16.vlgmr.msra.gmra.mxu2 %vm455_vm9, %v1282_v20  ;;  %1914 = vmatmul.msk.bf16.vlgmr.msrb.gmra.mxu3 %vm455_vm9, %v1282_v20 }
 0xfaa   :  { %1558 = vmatpush.bf16.msra.mxu2 %v2625_v26  ;;  %1571 = vmatpush.bf16.msrb.mxu3 %v2627_v39  ;;  %v1312_v26 = vperm.slane %v2700_v11, 1 }
 0xfae   :  { %1559 = vmatpush.bf16.msra.mxu2 %v2630_v29  ;;  %1572 = vmatpush.bf16.msrb.mxu3 %v2636_v43 }
 0xfb2   :  { %1560 = vmatpush.bf16.msra.mxu2 %v2639_v50  ;;  %1573 = vmatpush.bf16.msrb.mxu3 %v2643_v18 }
 0xfb6   :  { %1561 = vmatpush.bf16.msra.mxu2 %v2653_v48  ;;  %1574 = vmatpush.bf16.msrb.mxu3 %v2655_v17 }
0x102c   :  { %v1295_v57 = vpop.f32.mrf.mxu2  ;;  %v1308_v10 = vpop.f32.mrf.mxu3 }
0x102d   :  { %v1296_v61 = vadd.f32 %v1295_v57, %v2702_v13  ;;  %v1309_v22 = vadd.f32 %v1308_v10, %v2706_v42 }
0x102f   :  { %v1313_v63 = vadd.f32 %v1312_v26, %v1296_v61 }
0x1031   :  { %v1915_v39 = vmul.f32 -1.442695, %v1313_v63 }
0x1033   :  { %2089 = vpow2.f32 %v1915_v39 }
0x1034   :  { %v1297_v29 = vpop.f32.mrf.mxu2  ;;  %v1310_v3 = vpop.f32.mrf.mxu3 }
0x1039   :  { %v2090_v43 = vpop.eup %2089 }
0x103a   :  { %v1317_v0 = vadd.f32 1.0, %v2090_v43 }
0x103c   :  { %2091 = vrcp.f32 %v1317_v0  ;;  %v1329_v48 = vand.u32 2147483648, %v1317_v0  ;;  %v1327_v17 = vand.u32 2147483647, %v1317_v0  ;;  %vm1323_vm14 = vweird.f32 %v1317_v0 }
0x103e   :  { %v1330_v25 = vor.u32 1.1754944e-38, %v1329_v48  ;;  %vm1328_vm1 = vcmp.eq.f32.partialorder %v1327_v17, 8.507059e+37 }
0x1042   :  { %v2092_v50 = vpop.eup %2091 }
0x1043   :  { %v1319_v18 = vmul.f32 %v2092_v50, %v1317_v0  ;;  %vm1324_vm13 = vweird.f32 %v2092_v50 }
0x1044   :  { %vm1325_vm15 = vmor %vm1323_vm14, %vm1324_vm13  ;;  %vm1691_vm14 = vcmask 15360  }
0x1045   :  { %v1320_v2 = vsub.f32 1.0, %v1319_v18 }
0x1047   :  { %v1321_v15 = vmul.f32 %v2092_v50, %v1320_v2 }
0x1049   :  { %v1322_v36 = vadd.f32 %v2092_v50, %v1321_v15 }
0x104b   :  { %v1326_v7 = vsel %vm1325_vm15, %v2092_v50, %v1322_v36  ;;  %v1446_v50 = vperm.slane %v2700_v11, 3 }
0x104c   :  { %v1331_v60 = vsel %vm1328_vm1, %v1330_v25, %v1326_v7 }
0x104d   :  { %v1333_v5 = vmul.f32 %v1331_v60, %v1309_v22  ;;  %v1337_v24 = vsub.f32 1.0, %v1331_v60  ;;  %v1343_v12 = vmul.f32 %v2713_v21, %v1331_v60 }
0x104f   :  { %v1335_v6 = vadd.f32 %v1334_v59, %v1333_v5 }
0x1051   :  { %2093 = vtanh.f32 %v1335_v6 }
0x1057   :  { %v2094_v23 = vpop.eup %2093 }
0x1058   :  { %1339 = vrot.lane.b32.xlu2 %v2094_v23, %s2236_s5 }
0x10b2   :  { %v1340_v27 = vpop.permute.xlu2 %1339 }
0x10b3   :  { %v1342_v28 = vmul.f32 %v1340_v27, %v1337_v24 }
0x10b5   :  { %v1344_v33 = vadd.f32 %v1343_v12, %v1342_v28 }
0x10b7   :  { %2095 = vtanh.f32 %v1344_v33  ;;  %v1468_v33 = vperm.slane %v2708_v47, 3 }
0x10bd   :  { %v2734_v34 = vpop.eup %2095 }
0x10be   :  { %v1346_v35 = vpack.c.bf16 %v2734_v34, %v2734_v34 }
0x10c0   :  { %1348 = vrot.lane.b32.xlu0 %v1346_v35, %s2236_s5 }
0x1132   :  { %v1349_v37 = vpop.permute.xlu0 %1348 }
0x1133   :  { %1916 = vmatmul.msk.bf16.vlgmr.msra.gmra.mxu0 %vm455_vm9, %v1349_v37  ;;  %1917 = vmatmul.msk.bf16.vlgmr.msrb.gmra.mxu1 %vm455_vm9, %v1349_v37 }
0x11b0   :  { %v1362_v38 = vpop.f32.mrf.mxu0  ;;  %v1375_v19 = vpop.f32.mrf.mxu1 }
0x11b1   :  { %v1363_v31 = vadd.f32 %v1362_v38, %v2702_v13  ;;  %v1376_v58 = vadd.f32 %v1375_v19, %v2706_v42 }
0x11b3   :  { %v1380_v9 = vadd.f32 %v1379_v40, %v1363_v31 }
0x11b5   :  { %v1918_v1 = vmul.f32 -1.442695, %v1380_v9 }
0x11b7   :  { %2097 = vpow2.f32 %v1918_v1 }
0x11b8   :  { %v1364_v30 = vpop.f32.mrf.mxu0  ;;  %v1377_v44 = vpop.f32.mrf.mxu1 }
0x11bd   :  { %v2098_v45 = vpop.eup %2097 }
0x11be   :  { %v1384_v46 = vadd.f32 1.0, %v2098_v45 }
0x11c0   :  { %2099 = vrcp.f32 %v1384_v46  ;;  %v1396_v4 = vand.u32 2147483648, %v1384_v46  ;;  %v1394_v14 = vand.u32 2147483647, %v1384_v46  ;;  %vm1390_vm3 = vweird.f32 %v1384_v46 }
0x11c2   :  { %v1397_v16 = vor.u32 1.1754944e-38, %v1396_v4  ;;  %vm1395_vm5 = vcmp.eq.f32.partialorder %v1394_v14, 8.507059e+37 }
0x11c6   :  { %v2100_v41 = vpop.eup %2099 }
0x11c7   :  { %v1386_v52 = vmul.f32 %v2100_v41, %v1384_v46  ;;  %vm1391_vm2 = vweird.f32 %v2100_v41 }
0x11c8   :  { %vm1392_vm4 = vmor %vm1390_vm3, %vm1391_vm2 }
0x11c9   :  { %v1387_v56 = vsub.f32 1.0, %v1386_v52  ;;  %v1513_v52 = vperm.slane %v2700_v11, 4 }
0x11cb   :  { %v1388_v51 = vmul.f32 %v2100_v41, %v1387_v56 }
0x11cd   :  { %v1389_v54 = vadd.f32 %v2100_v41, %v1388_v51 }
0x11cf   :  { %v1393_v32 = vsel %vm1392_vm4, %v2100_v41, %v1389_v54 }
0x11d0   :  { %v1398_v8 = vsel %vm1395_vm5, %v1397_v16, %v1393_v32 }
0x11d1   :  { %v1400_v49 = vmul.f32 %v1398_v8, %v1376_v58  ;;  %v1404_v20 = vsub.f32 1.0, %v1398_v8  ;;  %v1410_v10 = vmul.f32 %v2734_v34, %v1398_v8 }
0x11d3   :  { %v1402_v62 = vadd.f32 %v1401_v53, %v1400_v49 }
0x11d5   :  { %2101 = vtanh.f32 %v1402_v62 }
0x11db   :  { %v2102_v55 = vpop.eup %2101 }
0x11dc   :  { %1406 = vrot.lane.b32.xlu1 %v2102_v55, %s2236_s5  ;;  %v1621_v55 = vld [vmem:[%s2902_s10 + $0x38] sm:$0xff] }
0x11dd   :  { %1664 = vmatpush.msra.mxu0 %v1621_v55 }
0x124e   :  { %v1407_v57 = vpop.permute.xlu1 %1406 }
0x124f   :  { %v1409_v61 = vmul.f32 %v1407_v57, %v1404_v20  ;;  %v1620_v20 = vld [vmem:[%s2902_s10 + $0x30] sm:$0xff] }
0x1250   :  { %1665 = vmatpush.msra.mxu0 %v1620_v20 }
0x1251   :  { %v1411_v26 = vadd.f32 %v1410_v10, %v1409_v61  ;;  %v1619_v61 = vld [vmem:[%s2902_s10 + $0x28] sm:$0xff] }
0x1252   :  { %1666 = vmatpush.msra.mxu0 %v1619_v61 }
0x1253   :  { %2103 = vtanh.f32 %v1411_v26 }
0x1259   :  { %v2747_v63 = vpop.eup %2103 }
0x125a   :  { %v1413_v39 = vpack.c.bf16 %v2747_v63, %v2747_v63 }
0x125c   :  { %1415 = vrot.lane.b32.xlu2 %v1413_v39, %s2236_s5 }
0x12b6   :  { %v1416_v29 = vpop.permute.xlu2 %1415 }
0x12b7   :  { %1919 = vmatmul.msk.bf16.vlgmr.msrb.gmra.mxu2 %vm455_vm9, %v1416_v29  ;;  %1920 = vmatmul.msk.bf16.vlgmr.msra.gmra.mxu3 %vm455_vm9, %v1416_v29 }
0x133a   :  { %v1429_v3 = vpop.f32.mrf.mxu2  ;;  %v1442_v43 = vpop.f32.mrf.mxu3 }
0x133b   :  { %v1430_v0 = vadd.f32 %v1429_v3, %v2702_v13  ;;  %v1443_v24 = vadd.f32 %v1442_v43, %v2706_v42  ;;  %v1618_v3 = vld [vmem:[%s2902_s10 + $0x20] sm:$0xff] }
0x133c   :  { %1667 = vmatpush.msra.mxu0 %v1618_v3 }
0x133d   :  { %v1447_v18 = vadd.f32 %v1446_v50, %v1430_v0  ;;  %v1535_v0 = vperm.slane %v2708_v47, 4 }
0x133f   :  { %v1921_v2 = vmul.f32 -1.442695, %v1447_v18 }
0x1341   :  { %2105 = vpow2.f32 %v1921_v2  ;;  %v1617_v2 = vld [vmem:[%s2902_s10 + $0x18] sm:$0xff] }
0x1342   :  { %v1431_v48 = vpop.f32.mrf.mxu2  ;;  %v1444_v15 = vpop.f32.mrf.mxu3  ;;  %1668 = vmatpush.msra.mxu0 %v1617_v2 }
0x1343   :  { %v1616_v48 = vld [vmem:[%s2902_s10 + $0x10] sm:$0xff]  ;;  %v1615_v15 = vld [vmem:[%s2902_s10 + $0x8] sm:$0xff] }
0x1344   :  { %1669 = vmatpush.msra.mxu0 %v1616_v48 }
0x1346   :  { %1670 = vmatpush.msra.mxu0 %v1615_v15 }
0x1347   :  { %v2106_v17 = vpop.eup %2105 }
0x1348   :  { %v1451_v36 = vadd.f32 1.0, %v2106_v17 }
0x134a   :  { %2107 = vrcp.f32 %v1451_v36  ;;  %v1463_v60 = vand.u32 2147483648, %v1451_v36  ;;  %v1461_v59 = vand.u32 2147483647, %v1451_v36  ;;  %vm1457_vm7 = vweird.f32 %v1451_v36 }
0x134c   :  { %v1464_v23 = vor.u32 1.1754944e-38, %v1463_v60  ;;  %vm1462_vm0 = vcmp.eq.f32.partialorder %v1461_v59, 8.507059e+37 }
0x1350   :  { %v2108_v25 = vpop.eup %2107 }
0x1351   :  { %v1453_v22 = vmul.f32 %v2108_v25, %v1451_v36  ;;  %vm1458_vm6 = vweird.f32 %v2108_v25 }
0x1352   :  { %vm1459_vm8 = vmor %vm1457_vm7, %vm1458_vm6 }
0x1353   :  { %v1454_v7 = vsub.f32 1.0, %v1453_v22 }
0x1355   :  { %v1455_v5 = vmul.f32 %v2108_v25, %v1454_v7 }
0x1357   :  { %v1456_v6 = vadd.f32 %v2108_v25, %v1455_v5 }
0x1359   :  { %v1460_v27 = vsel %vm1459_vm8, %v2108_v25, %v1456_v6 }
0x135a   :  { %v1465_v12 = vsel %vm1462_vm0, %v1464_v23, %v1460_v27  ;;  %v2805_v23 = vld [vmem:[%s2903_s11] ss:$0 sm:$0xff] }
0x135b   :  { %v1467_v28 = vmul.f32 %v1465_v12, %v1443_v24  ;;  %v1471_v38 = vsub.f32 1.0, %v1465_v12  ;;  %v1477_v31 = vmul.f32 %v2747_v63, %v1465_v12 }
0x135d   :  { %v1469_v35 = vadd.f32 %v1468_v33, %v1467_v28 }
0x135f   :  { %2109 = vtanh.f32 %v1469_v35 }
0x1365   :  { %v2110_v37 = vpop.eup %2109 }
0x1366   :  { %1473 = vrot.lane.b32.xlu0 %v2110_v37, %s2236_s5  ;;  %v1580_v37 = vperm.slane %v2700_v11, 5 }
0x13d8   :  { %v1474_v19 = vpop.permute.xlu0 %1473 }
0x13d9   :  { %v1476_v40 = vmul.f32 %v1474_v19, %v1471_v38 }
0x13db   :  { %v1478_v9 = vadd.f32 %v1477_v31, %v1476_v40 }
0x13dd   :  { %2111 = vtanh.f32 %v1478_v9 }
0x13e3   :  { %v2112_v1 = vpop.eup %2111 }
0x13e4   :  { %v1480_v30 = vpack.c.bf16 %v2112_v1, %v2112_v1 }
0x13e6   :  { %1482 = vrot.lane.b32.xlu1 %v1480_v30, %s2236_s5 }
0x1458   :  { %v1483_v44 = vpop.permute.xlu1 %1482 }
0x1459   :  { %1922 = vmatmul.msk.bf16.vlgmr.msrb.gmra.mxu0 %vm455_vm9, %v1483_v44  ;;  %1923 = vmatmul.msk.bf16.vlgmr.msra.gmra.mxu1 %vm455_vm9, %v1483_v44 }
0x14d6   :  { %v1496_v45 = vpop.f32.mrf.mxu0  ;;  %v1509_v46 = vpop.f32.mrf.mxu1 }
0x14d7   :  { %v1497_v41 = vadd.f32 %v1496_v45, %v2702_v13  ;;  %v1510_v26 = vadd.f32 %v1509_v46, %v2706_v42 }
0x14d9   :  { %v1514_v56 = vadd.f32 %v1513_v52, %v1497_v41 }
0x14db   :  { %v1924_v4 = vmul.f32 -1.442695, %v1514_v56 }
0x14dd   :  { %2113 = vpow2.f32 %v1924_v4 }
0x14de   :  { %v1498_v51 = vpop.f32.mrf.mxu0  ;;  %v1511_v14 = vpop.f32.mrf.mxu1 }
0x14e3   :  { %v2114_v54 = vpop.eup %2113 }
0x14e4   :  { %v1518_v16 = vadd.f32 1.0, %v2114_v54 }
0x14e6   :  { %2115 = vrcp.f32 %v1518_v16  ;;  %v1530_v49 = vand.u32 2147483648, %v1518_v16  ;;  %v1528_v62 = vand.u32 2147483647, %v1518_v16  ;;  %vm1524_vm11 = vweird.f32 %v1518_v16 }
0x14e8   :  { %v1531_v10 = vor.u32 1.1754944e-38, %v1530_v49  ;;  %vm1529_vm13 = vcmp.eq.f32.partialorder %v1528_v62, 8.507059e+37 }
0x14ec   :  { %v2116_v58 = vpop.eup %2115 }
0x14ed   :  { %v1520_v32 = vmul.f32 %v2116_v58, %v1518_v16  ;;  %vm1525_vm10 = vweird.f32 %v2116_v58 }
0x14ee   :  { %vm1526_vm12 = vmor %vm1524_vm11, %vm1525_vm10 }
0x14ef   :  { %v1521_v8 = vsub.f32 1.0, %v1520_v32  ;;  %v1602_v32 = vperm.slane %v2708_v47, 5 }
0x14f1   :  { %v1522_v53 = vmul.f32 %v2116_v58, %v1521_v8 }
0x14f3   :  { %v1523_v57 = vadd.f32 %v2116_v58, %v1522_v53 }
0x14f5   :  { %v1527_v39 = vsel %vm1526_vm12, %v2116_v58, %v1523_v57 }
0x14f6   :  { %v1532_v29 = vsel %vm1529_vm13, %v1531_v10, %v1527_v39 }
0x14f7   :  { %v1534_v43 = vmul.f32 %v1532_v29, %v1510_v26  ;;  %v1538_v17 = vsub.f32 1.0, %v1532_v29  ;;  %v1544_v25 = vmul.f32 %v2112_v1, %v1532_v29 }
0x14f9   :  { %v1536_v50 = vadd.f32 %v1535_v0, %v1534_v43 }
0x14fb   :  { %2117 = vtanh.f32 %v1536_v50 }
0x1501   :  { %v2118_v18 = vpop.eup %2117 }
0x1502   :  { %1540 = vrot.lane.b32.xlu2 %v2118_v18, %s2236_s5 }
0x150a   :  { %1632 = vrot.lane.b32.xlu2 %v2713_v21, %s2236_s5  ;;  %v1614_v21 = vld [vmem:[%s2902_s10] sm:$0xff] }
0x150b   :  { %1671 = vmatpush.msra.mxu0 %v1614_v21 }
0x1512   :  { %1638 = vrot.lane.b32.xlu2 %v2112_v1, %s2236_s5 }
0x155c   :  { %v1541_v36 = vpop.permute.xlu2 %1540 }
0x155d   :  { %v1543_v22 = vmul.f32 %v1541_v36, %v1538_v17 }
0x155f   :  { %v1545_v7 = vadd.f32 %v1544_v25, %v1543_v22 }
0x1561   :  { %2119 = vtanh.f32 %v1545_v7 }
0x1564   :  { %v1633_v60 = vpop.permute.xlu2 %1632 }
0x1565   :  { %1928 = vmatmul.msk.f32.vlgmr.msra.gmra.mxu0 %vm455_vm9, %v1633_v60 }
0x1567   :  { %v2120_v5 = vpop.eup %2119 }
0x1568   :  { %v1547_v59 = vpack.c.bf16 %v2120_v5, %v2120_v5 }
0x156a   :  { %1549 = vrot.lane.b32.xlu0 %v1547_v59, %s2236_s5 }
0x156c   :  { %v1639_v47 = vpop.permute.xlu2 %1638 }
0x1572   :  { %1634 = vrot.lane.b32.xlu0 %v2734_v34, %s2236_s5 }
0x157a   :  { %1640 = vrot.lane.b32.xlu0 %v2120_v5, %s2236_s5 }
0x15dc   :  { %v1550_v6 = vpop.permute.xlu0 %1549 }
0x15dd   :  { %1925 = vmatmul.msk.bf16.vlgmr.msra.gmra.mxu2 %vm455_vm9, %v1550_v6  ;;  %1926 = vmatmul.msk.bf16.vlgmr.msrb.gmra.mxu3 %vm455_vm9, %v1550_v6 }
0x15e2   :  { %v1673_v24 = vpop.f32.mrf.mxu0 }
0x15e3   :  { %v2808_v27 = vadd.f32 %v2805_v23, %v1673_v24 }
0x15e4   :  { %v1635_v12 = vpop.permute.xlu0 %1634 }
0x15e5   :  { %1929 = vmatmul.msk.f32.gmra.mxu0 %vm455_vm9, %v1635_v12  ;;  %v1692_v34 = vsel %vm1691_vm14, %v2808_v27, -inf }
0x15e6   :  { %1693 = vmax.xlane.f32.xlu2 %v1692_v34 }
0x15ec   :  { %v1641_v61 = vpop.permute.xlu0 %1640 }
0x1659   :  { %v1694_v26 = vpop.xlane.xlu2 %1693 }
0x165a   :  { %v1710_v39 = vsub.f32 %v2808_v27, %v1694_v26 }
0x165c   :  { %v1716_v29 = vmul.f32 1.442695, %v1710_v39 }
0x1660   :  { %v1563_v28 = vpop.f32.mrf.mxu2  ;;  %v1576_v33 = vpop.f32.mrf.mxu3 }
0x1661   :  { %v1564_v35 = vadd.f32 %v1563_v28, %v2702_v13  ;;  %v1577_v14 = vadd.f32 %v1576_v33, %v2706_v42 }
0x1662   :  { %v1676_v38 = vpop.f32.mrf.mxu0 }
0x1663   :  { %v1581_v19 = vadd.f32 %v1580_v37, %v1564_v35  ;;  %v2816_v31 = vadd.f32 %v2805_v23, %v1676_v38 }
0x1665   :  { %v1927_v40 = vmul.f32 -1.442695, %v1581_v19  ;;  %v1695_v9 = vsel %vm1691_vm14, %v2816_v31, -inf }
0x1666   :  { %1696 = vmax.xlane.f32.xlu0 %v1695_v9 }
0x1667   :  { %2121 = vpow2.f32 %v1927_v40 }
0x1668   :  { %v1565_v1 = vpop.f32.mrf.mxu2  ;;  %v1578_v30 = vpop.f32.mrf.mxu3 }
0x166d   :  { %v2122_v44 = vpop.eup %2121 }
0x166e   :  { %v1585_v45 = vadd.f32 1.0, %v2122_v44 }
0x1670   :  { %2123 = vrcp.f32 %v1585_v45  ;;  %v1597_v11 = vand.u32 2147483648, %v1585_v45  ;;  %v1595_v56 = vand.u32 2147483647, %v1585_v45  ;;  %vm1591_vm1 = vweird.f32 %v1585_v45 }
0x1672   :  { %v1598_v51 = vor.u32 1.1754944e-38, %v1597_v11  ;;  %vm1596_vm3 = vcmp.eq.f32.partialorder %v1595_v56, 8.507059e+37 }
0x1676   :  { %v2124_v46 = vpop.eup %2123 }
0x1677   :  { %v1587_v13 = vmul.f32 %v2124_v46, %v1585_v45  ;;  %vm1592_vm15 = vweird.f32 %v2124_v46 }
0x1678   :  { %vm1593_vm2 = vmor %vm1591_vm1, %vm1592_vm15 }
0x1679   :  { %v1588_v41 = vsub.f32 1.0, %v1587_v13 }
0x167b   :  { %v1589_v52 = vmul.f32 %v2124_v46, %v1588_v41 }
0x167d   :  { %v1590_v4 = vadd.f32 %v2124_v46, %v1589_v52 }
0x167f   :  { %v1594_v54 = vsel %vm1593_vm2, %v2124_v46, %v1590_v4 }
0x1680   :  { %v1599_v16 = vsel %vm1596_vm3, %v1598_v51, %v1594_v54 }
0x1681   :  { %v1601_v58 = vmul.f32 %v1599_v16, %v1577_v14  ;;  %v1605_v53 = vsub.f32 1.0, %v1599_v16  ;;  %v1611_v55 = vmul.f32 %v2120_v5, %v1599_v16 }
0x1683   :  { %v1603_v8 = vadd.f32 %v1602_v32, %v1601_v58 }
0x1685   :  { %2125 = vtanh.f32 %v1603_v8 }
0x168b   :  { %v2126_v49 = vpop.eup %2125 }
0x168c   :  { %1607 = vrot.lane.b32.xlu1 %v2126_v49, %s2236_s5 }
0x1694   :  { %1636 = vrot.lane.b32.xlu1 %v2747_v63, %s2236_s5 }
0x16d9   :  { %v1697_v50 = vpop.xlane.xlu0 %1696 }
0x16da   :  { %v1711_v15 = vsub.f32 %v2816_v31, %v1697_v50 }
0x16dc   :  { %v1718_v36 = vmul.f32 1.442695, %v1711_v15 }
0x16fe   :  { %v1608_v62 = vpop.permute.xlu1 %1607 }
0x16ff   :  { %v1610_v20 = vmul.f32 %v1608_v62, %v1605_v53 }
0x1701   :  { %v1612_v57 = vadd.f32 %v1611_v55, %v1610_v20 }
0x1703   :  { %2127 = vtanh.f32 %v1612_v57 }
0x1704   :  { %2129 = vpow2.f32 %v1716_v29 }
0x1705   :  { %2131 = vpow2.f32 %v1718_v36 }
0x1706   :  { %v1637_v42 = vpop.permute.xlu1 %1636 }
0x1707   :  { %1930 = vmatmul.msk.f32.gmra.mxu0 %vm455_vm9, %v1637_v42 }
0x1709   :  { %v2128_v10 = vpop.eup %2127 }
0x170a   :  { %1642 = vrot.lane.b32.xlu1 %v2128_v10, %s2236_s5  ;;  %v2130_v18 = vpop.eup %2129 }
0x170b   :  { %v1728_v17 = vsel %vm1691_vm14, %v2130_v18, 0.0  ;;  %v2132_v60 = vpop.eup %2131 }
0x170c   :  { %v1731_v5 = vsel %vm1691_vm14, %v2132_v60, 0.0 }
0x170f   :  { %1931 = vmatmul.msk.f32.gmra.mxu0 %vm455_vm9, %v1639_v47 }
0x1717   :  { %1932 = vmatmul.msk.f32.gmra.mxu0 %vm455_vm9, %v1641_v61 }
0x177c   :  { %v1643_v63 = vpop.permute.xlu1 %1642 }
0x177d   :  { %1933 = vmatmul.msk.f32.gmra.mxu0 %vm455_vm9, %v1643_v63 }
0x1784   :  { %v1679_v3 = vpop.f32.mrf.mxu0 }
0x1785   :  { %v2832_v43 = vadd.f32 %v2805_v23, %v1679_v3 }
0x1787   :  { %v1698_v0 = vsel %vm1691_vm14, %v2832_v43, -inf }
0x1788   :  { %1699 = vmax.xlane.f32.xlu1 %v1698_v0 }
0x178c   :  { %v1682_v2 = vpop.f32.mrf.mxu0 }
0x178d   :  { %v2837_v48 = vadd.f32 %v2805_v23, %v1682_v2 }
0x178f   :  { %v1701_v21 = vsel %vm1691_vm14, %v2837_v48, -inf }
0x1790   :  { %1702 = vmax.xlane.f32.xlu2 %v1701_v21  ;;  %1729 = vadd.xlane.f32.xlu1 %v1728_v17 }
0x1794   :  { %v1685_v25 = vpop.f32.mrf.mxu0 }
0x1795   :  { %v2844_v22 = vadd.f32 %v2805_v23, %v1685_v25 }
0x1797   :  { %v1704_v7 = vsel %vm1691_vm14, %v2844_v22, -inf }
0x1798   :  { %1705 = vmax.xlane.f32.xlu2 %v1704_v7 }
0x17a0   :  { %1732 = vadd.xlane.f32.xlu2 %v1731_v5 }
0x17fa   :  { %v1688_v59 = vpop.f32.mrf.mxu0 }
0x17fb   :  { %v2850_v6 = vadd.f32 %v2805_v23, %v1688_v59  ;;  %v1700_v24 = vpop.xlane.xlu1 %1699 }
0x17fc   :  { %v1712_v12 = vsub.f32 %v2832_v43, %v1700_v24 }
0x17fd   :  { %v1707_v34 = vsel %vm1691_vm14, %v2850_v6, -inf }
0x17fe   :  { %v1720_v28 = vmul.f32 1.442695, %v1712_v12  ;;  %1708 = vmax.xlane.f32.xlu0 %v1707_v34 }
0x1800   :  { %2133 = vpow2.f32 %v1720_v28 }
0x1803   :  { %v1730_v33 = vpop.xlane.xlu1 %1729  ;;  %v1703_v35 = vpop.xlane.xlu2 %1702 }
0x1804   :  { %2135 = vlog2.f32 %v1730_v33  ;;  %v1713_v37 = vsub.f32 %v2837_v48, %v1703_v35 }
0x1806   :  { %v2134_v38 = vpop.eup %2133  ;;  %v1722_v19 = vmul.f32 1.442695, %v1713_v37 }
0x1807   :  { %v1734_v40 = vsel %vm1691_vm14, %v2134_v38, 0.0 }
0x1808   :  { %2137 = vpow2.f32 %v1722_v19  ;;  %1735 = vadd.xlane.f32.xlu0 %v1734_v40 }
0x180a   :  { %v2136_v23 = vpop.eup %2135 }
0x180b   :  { %v1747_v9 = vmul.f32 0.6931472, %v2136_v23  ;;  %v1706_v1 = vpop.xlane.xlu2 %1705 }
0x180c   :  { %v1714_v30 = vsub.f32 %v2844_v22, %v1706_v1 }
0x180d   :  { %v1758_v44 = vadd.f32 %v1747_v9, %v1694_v26 }
0x180e   :  { %v2138_v45 = vpop.eup %2137  ;;  %v1724_v46 = vmul.f32 1.442695, %v1714_v30 }
0x180f   :  { %v1764_v13 = vsub.f32 %v2808_v27, %v1758_v44  ;;  %v1737_v41 = vsel %vm1691_vm14, %v2138_v45, 0.0 }
0x1810   :  { %2139 = vpow2.f32 %v1724_v46  ;;  %1738 = vadd.xlane.f32.xlu1 %v1737_v41 }
0x1811   :  { %1770 = vst.msk [vmem:[%s2904_s12] sm:$0xff] %vm1691_vm14, %v1764_v13 }
0x1813   :  { %v1733_v11 = vpop.xlane.xlu2 %1732 }
0x1814   :  { %2141 = vlog2.f32 %v1733_v11 }
0x1816   :  { %v2140_v52 = vpop.eup %2139 }
0x1817   :  { %v1740_v56 = vsel %vm1691_vm14, %v2140_v52, 0.0 }
0x1818   :  { %1741 = vadd.xlane.f32.xlu2 %v1740_v56 }
0x181a   :  { %v2142_v4 = vpop.eup %2141 }
0x181b   :  { %v1749_v51 = vmul.f32 0.6931472, %v2142_v4 }
0x181d   :  { %v1759_v14 = vadd.f32 %v1749_v51, %v1697_v50 }
0x181f   :  { %v1765_v27 = vsub.f32 %v2816_v31, %v1759_v14 }
0x1821   :  { %1771 = vst.msk [vmem:[%s2904_s12 + $0x8] sm:$0xff] %vm1691_vm14, %v1765_v27 }
0x1871   :  { %v1709_v54 = vpop.xlane.xlu0 %1708 }
0x1872   :  { %v1715_v16 = vsub.f32 %v2850_v6, %v1709_v54 }
0x1874   :  { %v1726_v58 = vmul.f32 1.442695, %v1715_v16 }
0x1876   :  { %2143 = vpow2.f32 %v1726_v58 }
0x187b   :  { %v1736_v32 = vpop.xlane.xlu0 %1735 }
0x187c   :  { %v2144_v8 = vpop.eup %2143  ;;  %2145 = vlog2.f32 %v1736_v32 }
0x187d   :  { %v1743_v49 = vsel %vm1691_vm14, %v2144_v8, 0.0 }
0x187e   :  { %1744 = vadd.xlane.f32.xlu0 %v1743_v49 }
0x1882   :  { %v2146_v53 = vpop.eup %2145 }
0x1883   :  { %v1751_v62 = vmul.f32 0.6931472, %v2146_v53  ;;  %v1739_v55 = vpop.xlane.xlu1 %1738 }
0x1884   :  { %2147 = vlog2.f32 %v1739_v55 }
0x1885   :  { %v1760_v31 = vadd.f32 %v1751_v62, %v1700_v24 }
0x1887   :  { %v1766_v20 = vsub.f32 %v2832_v43, %v1760_v31 }
0x1889   :  { %1772 = vst.msk [vmem:[%s2904_s12 + $0x10] sm:$0xff] %vm1691_vm14, %v1766_v20 }
0x188a   :  { %v2148_v57 = vpop.eup %2147 }
0x188b   :  { %v1753_v42 = vmul.f32 0.6931472, %v2148_v57  ;;  %v1742_v10 = vpop.xlane.xlu2 %1741 }
0x188c   :  { %2149 = vlog2.f32 %v1742_v10 }
0x188d   :  { %v1761_v47 = vadd.f32 %v1753_v42, %v1703_v35 }
0x188f   :  { %v1767_v61 = vsub.f32 %v2837_v48, %v1761_v47 }
0x1891   :  { %1773 = vst.msk [vmem:[%s2904_s12 + $0x18] sm:$0xff] %vm1691_vm14, %v1767_v61 }
0x1892   :  { %v2150_v26 = vpop.eup %2149 }
0x1893   :  { %v1755_v63 = vmul.f32 0.6931472, %v2150_v26 }
0x1895   :  { %v1762_v39 = vadd.f32 %v1755_v63, %v1706_v1 }
0x1897   :  { %v1768_v29 = vsub.f32 %v2844_v22, %v1762_v39 }
0x1899   :  { %1774 = vst.msk [vmem:[%s2904_s12 + $0x20] sm:$0xff] %vm1691_vm14, %v1768_v29 }
0x18f1   :  { %v1745_v3 = vpop.xlane.xlu0 %1744 }
0x18f2   :  { %2151 = vlog2.f32 %v1745_v3 }
0x18f8   :  { %v2152_v43 = vpop.eup %2151 }
0x18f9   :  { %v1757_v0 = vmul.f32 0.6931472, %v2152_v43 }
0x18fb   :  { %v1763_v50 = vadd.f32 %v1757_v0, %v1709_v54 }
0x18fd   :  { %v1769_v18 = vsub.f32 %v2850_v6, %v1763_v50 }
0x18ff   :  { %1775 = vst.msk [vmem:[%s2904_s12 + $0x28] sm:$0xff] %vm1691_vm14, %v1769_v18 }
0x1900   :  { %1780 = vsyncpa [#allocation5], 1 }
0x1901   :  { %1781 = vsyncpa [#allocation7], 1 }

</bundles_post_ra>
